<compile_context>
chip_gen: v7x
topology: tpu7x:2x2x1
jax: 0.10.0
libtpu: 0.0.40
codegen_flags: <defaults>
</compile_context>

<pallas_src>
import math
from functools import partial

import jax
import jax.numpy as jnp
from jax.experimental import pallas as pl
from jax.experimental.pallas import tpu as pltpu

D_K = 32
D_V = 32
D_MODEL = 128
N_HEADS = 4
D_FF = 512
LN_EPS = 1e-5


def _layer_norm(x):
    # nn.LayerNorm(d_model) freshly constructed in forward(): gamma=1, beta=0.
    mu = jnp.mean(x, axis=-1, keepdims=True)
    xc = x - mu
    var = jnp.mean(xc * xc, axis=-1, keepdims=True)
    return xc * jax.lax.rsqrt(var + LN_EPS)


def _encoder_layer_kernel(x_ref, mask_ref, wbig_ref, wo_ref, w1_ref, w2_ref,
                          out_ref, attn_ref, ctx_ref):
    bt, s, dm = x_ref.shape
    rows = bt * s

    # (BT, S, dm) -> (BT*S, dm): lane-dense slab feeding every dense matmul.
    x2 = x_ref[...].reshape(rows, dm).astype(jnp.bfloat16)

    # ---- fused input projections: [fc0 | W_Q | W_K | W_V] -------------------
    proj = jnp.dot(x2, wbig_ref[...], preferred_element_type=jnp.float32)  # (R, 512)
    residual = proj[:, 0:dm]                                   # (R, 128) f32
    q_all = proj[:, dm:2 * dm] * (1.0 / math.sqrt(D_K))        # scale folded once
    k_all = proj[:, 2 * dm:3 * dm]
    v_all = proj[:, 3 * dm:4 * dm]

    q3 = q_all.reshape(bt, s, dm).astype(jnp.bfloat16)
    k3 = k_all.reshape(bt, s, dm).astype(jnp.bfloat16)
    v3 = v_all.reshape(bt, s, dm).astype(jnp.bfloat16)
    masked = mask_ref[...] != 0                                # (BT, S, S) bool

    # ---- per-head scaled-dot-product attention (batched over BT) -----------
    for h in range(N_HEADS):                                   # static unroll
        qh = q3[:, :, h * D_K:(h + 1) * D_K]                   # (BT, S, Dk)
        kh = k3[:, :, h * D_K:(h + 1) * D_K]
        vh = v3[:, :, h * D_V:(h + 1) * D_V]

        # contract last dims -> no explicit K transpose
        scores = jnp.einsum("bqd,bkd->bqk", qh, kh,
                            preferred_element_type=jnp.float32)
        scores = jnp.where(masked, jnp.float32(-1e9), scores)

        # numerically stable, EXACT softmax (attn is a returned output)
        row_max = jnp.max(scores, axis=-1, keepdims=True)
        exps = jnp.exp(scores - row_max)
        attn_h = exps / jnp.sum(exps, axis=-1, keepdims=True)  # (BT, S, S) f32
        attn_ref[:, h] = attn_h.astype(attn_ref.dtype)

        ctx_h = jnp.einsum("bqk,bkd->bqd", attn_h.astype(jnp.bfloat16), vh,
                           preferred_element_type=jnp.float32)  # (BT, S, Dv)
        ctx_ref[:, h * D_V:(h + 1) * D_V] = ctx_h.reshape(rows, D_V)

    # ---- output projection + residual + LayerNorm ---------------------------
    ctx2 = ctx_ref[...].astype(jnp.bfloat16)                    # (R, 128)
    attn_out = jnp.dot(ctx2, wo_ref[...], preferred_element_type=jnp.float32)
    y1 = _layer_norm(attn_out + residual)                       # (R, 128) f32

    # ---- PoswiseFeedForwardNet ----------------------------------------------
    hidden = jnp.maximum(
        jnp.dot(y1.astype(jnp.bfloat16), w1_ref[...],
                preferred_element_type=jnp.float32), 0.0)       # (R, 512)
    ff = jnp.dot(hidden.astype(jnp.bfloat16), w2_ref[...],
                 preferred_element_type=jnp.float32)            # (R, 128)
    out = _layer_norm(ff + y1)
    out_ref[...] = out.reshape(bt, s, dm).astype(out_ref.dtype)


def _pack_params(params):
    """Fuse fc0|W_Q|W_K|W_V into one [128, 512] weight; cast all to bf16."""
    wfc0, wq, wk, wv, wo, w1, w2 = params
    wbig = jnp.concatenate([wfc0, wq, wk, wv], axis=1).astype(jnp.bfloat16)
    return wbig, wo.astype(jnp.bfloat16), w1.astype(jnp.bfloat16), \
        w2.astype(jnp.bfloat16)


def _pick_block_b(B, S, rows_target=256):
    """Largest divisor of B with BT*S <= rows_target, keeping >=2 grid steps
    (v7x has 2 TensorCores) whenever possible."""
    divs = [d for d in range(1, B + 1) if B % d == 0]
    cands = [d for d in divs if d * S <= rows_target] or [1]
    multi = [d for d in cands if B // d >= 2]
    return max(multi) if multi else max(cands)


def encoder_layer(x, attn_mask, params, block_b=None):
    """x: [B, S, d_model] f32; attn_mask: [B, S, S] bool/int (nonzero=masked).

    params = (w_fc0, w_q, w_k, w_v, w_o, w_ff1, w_ff2), each stored as
    [in_features, out_features] (i.e. transposed vs. torch nn.Linear.weight).
    Returns (enc_outputs [B, S, d_model] f32, attn [B, n_heads, S, S] f32).
    """
    B, S, dm = x.shape
    assert dm == D_MODEL
    BT = block_b if block_b is not None else _pick_block_b(B, S)
    assert B % BT == 0, "batch must be divisible by the batch block"

    mask_i8 = attn_mask.astype(jnp.int8)          # 4x less mask DMA than int32
    wbig, wo, w1, w2 = _pack_params(params)

    def const2(shape):
        return pl.BlockSpec(shape, lambda b: (0, 0))

    out, attn = pl.pallas_call(
        _encoder_layer_kernel,
        grid=(B // BT,),
        in_specs=[
            pl.BlockSpec((BT, S, dm), lambda b: (b, 0, 0)),          # x
            pl.BlockSpec((BT, S, S), lambda b: (b, 0, 0)),           # mask (i8)
            const2((dm, 4 * dm)),                                    # fc0|Q|K|V
            const2((N_HEADS * D_V, dm)),                             # out proj
            const2((dm, D_FF)),                                      # ffn fc1
            const2((D_FF, dm)),                                      # ffn fc2
        ],
        out_specs=[
            pl.BlockSpec((BT, S, dm), lambda b: (b, 0, 0)),
            pl.BlockSpec((BT, N_HEADS, S, S), lambda b: (b, 0, 0, 0)),
        ],
        out_shape=[
            jax.ShapeDtypeStruct((B, S, dm), jnp.float32),
            jax.ShapeDtypeStruct((B, N_HEADS, S, S), jnp.float32),
        ],
        scratch_shapes=[pltpu.VMEM((BT * S, N_HEADS * D_V), jnp.float32)],
        compiler_params=pltpu.CompilerParams(
            dimension_semantics=("parallel",)),
    )(x, mask_i8, wbig, wo, w1, w2)
    return out, attn


# ---------------------------- pure-JAX reference -----------------------------
# Mirrors the module math under the same mixed-precision policy as the kernel
# (bf16 matmul inputs, f32 accumulation, f32 softmax / LayerNorm), so the
# check isolates kernel bugs from the intentional bf16 rounding.
def _reference(x, attn_mask, params):
    wbig, wo, w1, w2 = _pack_params(params)
    B, S, dm = x.shape
    x2 = x.reshape(B * S, dm).astype(jnp.bfloat16)
    proj = jnp.dot(x2, wbig, preferred_element_type=jnp.float32)
    residual = proj[:, :dm]
    scale = 1.0 / math.sqrt(D_K)

    q = ((proj[:, dm:2 * dm] * scale).reshape(B, S, N_HEADS, D_K)
         .transpose(0, 2, 1, 3).astype(jnp.bfloat16))
    k = (proj[:, 2 * dm:3 * dm].reshape(B, S, N_HEADS, D_K)
         .transpose(0, 2, 1, 3).astype(jnp.bfloat16))
    v = (proj[:, 3 * dm:4 * dm].reshape(B, S, N_HEADS, D_V)
         .transpose(0, 2, 1, 3).astype(jnp.bfloat16))

    scores = jnp.einsum("bhqd,bhkd->bhqk", q, k,
                        preferred_element_type=jnp.float32)
    scores = jnp.where(attn_mask[:, None, :, :] != 0, jnp.float32(-1e9), scores)
    row_max = jnp.max(scores, axis=-1, keepdims=True)
    exps = jnp.exp(scores - row_max)
    attn = exps / jnp.sum(exps, axis=-1, keepdims=True)

    ctx = jnp.einsum("bhqk,bhkd->bhqd", attn.astype(jnp.bfloat16), v,
                     preferred_element_type=jnp.float32)
    ctx = ctx.transpose(0, 2, 1, 3).reshape(B * S, N_HEADS * D_V)
    attn_out = jnp.dot(ctx.astype(jnp.bfloat16), wo,
                       preferred_element_type=jnp.float32)
    y1 = _layer_norm(attn_out + residual)

    hidden = jnp.maximum(jnp.dot(y1.astype(jnp.bfloat16), w1,
                                 preferred_element_type=jnp.float32), 0.0)
    ff = jnp.dot(hidden.astype(jnp.bfloat16), w2,
                 preferred_element_type=jnp.float32)
    out = _layer_norm(ff + y1).reshape(B, S, dm)
    return out, attn


if __name__ == "__main__":
    B, S = 2, 8
    key = jax.random.PRNGKey(0)
    keys = jax.random.split(key, 9)

    x = jax.random.normal(keys[0], (B, S, D_MODEL), dtype=jnp.float32)
    attn_mask = jax.random.bernoulli(keys[1], p=0.3, shape=(B, S, S))

    def init_w(k, fan_in, fan_out):
        bound = 1.0 / math.sqrt(fan_in)
        return jax.random.uniform(k, (fan_in, fan_out), jnp.float32,
                                  -bound, bound)

    params = (
        init_w(keys[2], D_MODEL, D_MODEL),            # fc0 (residual proj)
        init_w(keys[3], D_MODEL, N_HEADS * D_K),      # W_Q
        init_w(keys[4], D_MODEL, N_HEADS * D_K),      # W_K
        init_w(keys[5], D_MODEL, N_HEADS * D_V),      # W_V
        init_w(keys[6], N_HEADS * D_V, D_MODEL),      # fc (output proj)
        init_w(keys[7], D_MODEL, D_FF),               # ffn fc1
        init_w(keys[8], D_FF, D_MODEL),               # ffn fc2
    )

    out, attn = encoder_layer(x, attn_mask, params)
    jax.block_until_ready((out, attn))

    out_ref, attn_ref = _reference(x, attn_mask, params)
    assert jnp.allclose(attn, attn_ref, atol=1e-3, rtol=1e-3), (
        "attn mismatch", float(jnp.max(jnp.abs(attn - attn_ref))))
    assert jnp.allclose(out, out_ref, atol=2e-3, rtol=2e-3), (
        "output mismatch", float(jnp.max(jnp.abs(out - out_ref))))

    print("KERNEL_OK")
</pallas_src>

<mosaic_0001>
module attributes {stable_mosaic.version = 11 : i64} {
  func.func @_encoder_layer_kernel(%arg0: i32, %arg1: memref<1x8x128xf32, #tpu.memory_space<vmem>>, %arg2: memref<1x8x8xi8, #tpu.memory_space<vmem>>, %arg3: memref<128x512xbf16, #tpu.memory_space<vmem>>, %arg4: memref<128x128xbf16, #tpu.memory_space<vmem>>, %arg5: memref<128x512xbf16, #tpu.memory_space<vmem>>, %arg6: memref<512x128xbf16, #tpu.memory_space<vmem>>, %arg7: memref<1x8x128xf32, #tpu.memory_space<vmem>>, %arg8: memref<1x4x8x8xf32, #tpu.memory_space<vmem>>, %arg9: memref<8x128xf32, #tpu.memory_space<vmem>>) attributes {dimension_semantics = [#tpu.dimension_semantics<parallel>], iteration_bounds = array<i64: 2>, scalar_prefetch = 0 : i64, scratch_operands = 1 : i64, tpu.core_type = #tpu.core_type<tc>, window_params = [{transform_indices = @transform_0, window_bounds = array<i64: 1, 8, 128>}, {transform_indices = @transform_1, window_bounds = array<i64: 1, 8, 8>}, {pipeline_mode = #tpu.pipeline_mode<synchronous>, transform_indices = @transform_2, window_bounds = array<i64: 128, 512>}, {pipeline_mode = #tpu.pipeline_mode<synchronous>, transform_indices = @transform_3, window_bounds = array<i64: 128, 128>}, {pipeline_mode = #tpu.pipeline_mode<synchronous>, transform_indices = @transform_4, window_bounds = array<i64: 128, 512>}, {pipeline_mode = #tpu.pipeline_mode<synchronous>, transform_indices = @transform_5, window_bounds = array<i64: 512, 128>}, {transform_indices = @transform_6, window_bounds = array<i64: 1, 8, 128>}, {transform_indices = @transform_7, window_bounds = array<i64: 1, 4, 8, 8>}]} {
    %c0 = arith.constant 0 : index
    %c0_0 = arith.constant 0 : index
    %c0_1 = arith.constant 0 : index
    %0 = vector.load %arg1[%c0, %c0_0, %c0_1] : memref<1x8x128xf32, #tpu.memory_space<vmem>>, vector<1x8x128xf32>
    %1 = vector.shape_cast %0 : vector<1x8x128xf32> to vector<8x128xf32>
    %2 = arith.truncf %1 : vector<8x128xf32> to vector<8x128xbf16>
    %c0_2 = arith.constant 0 : index
    %c0_3 = arith.constant 0 : index
    %3 = vector.load %arg3[%c0_2, %c0_3] : memref<128x512xbf16, #tpu.memory_space<vmem>>, vector<128x512xbf16>
    %cst = arith.constant dense<0.000000e+00> : vector<8x512xf32>
    %4 = tpu.matmul %2, %3, %cst {dimension_numbers = #tpu.dot_dimension_numbers<[1], [0], [0], [1], [0, 0, 1, 1], [], []>} : vector<8x128xbf16>, vector<128x512xbf16>, vector<8x512xf32> -> vector<8x512xf32>
    %5 = vector.extract_strided_slice %4 {offsets = [0, 0], sizes = [8, 128], strides = [1, 1]} : vector<8x512xf32> to vector<8x128xf32>
    %6 = vector.extract_strided_slice %4 {offsets = [0, 128], sizes = [8, 128], strides = [1, 1]} : vector<8x512xf32> to vector<8x128xf32>
    %cst_4 = arith.constant 0.176776692 : f32
    %7 = vector.broadcast %cst_4 : f32 to vector<8x128xf32>
    %8 = arith.mulf %6, %7 : vector<8x128xf32>
    %9 = vector.extract_strided_slice %4 {offsets = [0, 256], sizes = [8, 128], strides = [1, 1]} : vector<8x512xf32> to vector<8x128xf32>
    %10 = vector.extract_strided_slice %4 {offsets = [0, 384], sizes = [8, 128], strides = [1, 1]} : vector<8x512xf32> to vector<8x128xf32>
    %11 = vector.shape_cast %8 : vector<8x128xf32> to vector<1x8x128xf32>
    %12 = arith.truncf %11 : vector<1x8x128xf32> to vector<1x8x128xbf16>
    %13 = vector.shape_cast %9 : vector<8x128xf32> to vector<1x8x128xf32>
    %14 = arith.truncf %13 : vector<1x8x128xf32> to vector<1x8x128xbf16>
    %15 = vector.shape_cast %10 : vector<8x128xf32> to vector<1x8x128xf32>
    %16 = arith.truncf %15 : vector<1x8x128xf32> to vector<1x8x128xbf16>
    %c0_5 = arith.constant 0 : index
    %c0_6 = arith.constant 0 : index
    %c0_7 = arith.constant 0 : index
    %17 = vector.load %arg2[%c0_5, %c0_6, %c0_7] : memref<1x8x8xi8, #tpu.memory_space<vmem>>, vector<1x8x8xi8>
    %c0_i8 = arith.constant 0 : i8
    %18 = vector.broadcast %c0_i8 : i8 to vector<1x8x8xi8>
    %19 = arith.cmpi ne, %17, %18 : vector<1x8x8xi8>
    %20 = vector.extract_strided_slice %12 {offsets = [0, 0, 0], sizes = [1, 8, 32], strides = [1, 1, 1]} : vector<1x8x128xbf16> to vector<1x8x32xbf16>
    %21 = vector.extract_strided_slice %14 {offsets = [0, 0, 0], sizes = [1, 8, 32], strides = [1, 1, 1]} : vector<1x8x128xbf16> to vector<1x8x32xbf16>
    %22 = vector.extract_strided_slice %16 {offsets = [0, 0, 0], sizes = [1, 8, 32], strides = [1, 1, 1]} : vector<1x8x128xbf16> to vector<1x8x32xbf16>
    "tpu.trace_start"() <{level = 10 : i32, message = "bqd,bkd->bqk"}> : () -> ()
    %cst_8 = arith.constant dense<0.000000e+00> : vector<1x8x8xf32>
    %23 = tpu.matmul %20, %21, %cst_8 {dimension_numbers = #tpu.dot_dimension_numbers<[2], [2], [1], [1], [0, 0, 0, 1, 1, 1], [0], [0]>} : vector<1x8x32xbf16>, vector<1x8x32xbf16>, vector<1x8x8xf32> -> vector<1x8x8xf32>
    %cst_9 = arith.constant -1.000000e+09 : f32
    "tpu.trace_stop"() : () -> ()
    %24 = vector.broadcast %cst_9 : f32 to vector<1x8x8xf32>
    %25 = arith.select %19, %24, %23 : vector<1x8x8xi1>, vector<1x8x8xf32>
    %cst_10 = arith.constant dense<0xFF800000> : vector<1x8xf32>
    %26 = vector.multi_reduction <maximumf>, %25, %cst_10 [2] : vector<1x8x8xf32> to vector<1x8xf32>
    %27 = vector.shape_cast %26 : vector<1x8xf32> to vector<1x8x1xf32>
    %28 = vector.broadcast %27 : vector<1x8x1xf32> to vector<1x8x8xf32>
    %29 = arith.subf %25, %28 : vector<1x8x8xf32>
    %30 = math.exp %29 : vector<1x8x8xf32>
    %cst_11 = arith.constant dense<0.000000e+00> : vector<1x8xf32>
    %31 = vector.multi_reduction <add>, %30, %cst_11 [2] : vector<1x8x8xf32> to vector<1x8xf32>
    %32 = vector.shape_cast %31 : vector<1x8xf32> to vector<1x8x1xf32>
    %33 = vector.broadcast %32 : vector<1x8x1xf32> to vector<1x8x8xf32>
    %34 = arith.divf %30, %33 : vector<1x8x8xf32>
    %c0_12 = arith.constant 0 : index
    %c0_13 = arith.constant 0 : index
    %c0_14 = arith.constant 0 : index
    %c0_15 = arith.constant 0 : index
    %35 = vector.load %arg8[%c0_12, %c0_13, %c0_14, %c0_15] : memref<1x4x8x8xf32, #tpu.memory_space<vmem>>, vector<1x1x8x8xf32>
    %36 = vector.shape_cast %35 : vector<1x1x8x8xf32> to vector<1x8x8xf32>
    %37 = vector.shape_cast %34 : vector<1x8x8xf32> to vector<1x1x8x8xf32>
    tpu.vector_store %arg8[%c0_12, %c0_13, %c0_14, %c0_15], %37 {strides = array<i32>} : memref<1x4x8x8xf32, #tpu.memory_space<vmem>>, vector<1x1x8x8xf32>,
    %38 = arith.truncf %34 : vector<1x8x8xf32> to vector<1x8x8xbf16>
    "tpu.trace_start"() <{level = 10 : i32, message = "bqk,bkd->bqd"}> : () -> ()
    %cst_16 = arith.constant dense<0.000000e+00> : vector<1x8x32xf32>
    %39 = tpu.matmul %38, %22, %cst_16 {dimension_numbers = #tpu.dot_dimension_numbers<[2], [1], [1], [2], [0, 0, 0, 1, 1, 2], [0], [0]>} : vector<1x8x8xbf16>, vector<1x8x32xbf16>, vector<1x8x32xf32> -> vector<1x8x32xf32>
    "tpu.trace_stop"() : () -> ()
    %40 = vector.shape_cast %39 : vector<1x8x32xf32> to vector<8x32xf32>
    %c0_17 = arith.constant 0 : index
    %c0_18 = arith.constant 0 : index
    %41 = vector.load %arg9[%c0_17, %c0_18] : memref<8x128xf32, #tpu.memory_space<vmem>>, vector<8x32xf32>
    tpu.vector_store %arg9[%c0_17, %c0_18], %40 {strides = array<i32>} : memref<8x128xf32, #tpu.memory_space<vmem>>, vector<8x32xf32>,
    %42 = vector.extract_strided_slice %12 {offsets = [0, 0, 32], sizes = [1, 8, 32], strides = [1, 1, 1]} : vector<1x8x128xbf16> to vector<1x8x32xbf16>
    %43 = vector.extract_strided_slice %14 {offsets = [0, 0, 32], sizes = [1, 8, 32], strides = [1, 1, 1]} : vector<1x8x128xbf16> to vector<1x8x32xbf16>
    %44 = vector.extract_strided_slice %16 {offsets = [0, 0, 32], sizes = [1, 8, 32], strides = [1, 1, 1]} : vector<1x8x128xbf16> to vector<1x8x32xbf16>
    "tpu.trace_start"() <{level = 10 : i32, message = "bqd,bkd->bqk"}> : () -> ()
    %cst_19 = arith.constant dense<0.000000e+00> : vector<1x8x8xf32>
    %45 = tpu.matmul %42, %43, %cst_19 {dimension_numbers = #tpu.dot_dimension_numbers<[2], [2], [1], [1], [0, 0, 0, 1, 1, 1], [0], [0]>} : vector<1x8x32xbf16>, vector<1x8x32xbf16>, vector<1x8x8xf32> -> vector<1x8x8xf32>
    %cst_20 = arith.constant -1.000000e+09 : f32
    "tpu.trace_stop"() : () -> ()
    %46 = vector.broadcast %cst_20 : f32 to vector<1x8x8xf32>
    %47 = arith.select %19, %46, %45 : vector<1x8x8xi1>, vector<1x8x8xf32>
    %cst_21 = arith.constant dense<0xFF800000> : vector<1x8xf32>
    %48 = vector.multi_reduction <maximumf>, %47, %cst_21 [2] : vector<1x8x8xf32> to vector<1x8xf32>
    %49 = vector.shape_cast %48 : vector<1x8xf32> to vector<1x8x1xf32>
    %50 = vector.broadcast %49 : vector<1x8x1xf32> to vector<1x8x8xf32>
    %51 = arith.subf %47, %50 : vector<1x8x8xf32>
    %52 = math.exp %51 : vector<1x8x8xf32>
    %cst_22 = arith.constant dense<0.000000e+00> : vector<1x8xf32>
    %53 = vector.multi_reduction <add>, %52, %cst_22 [2] : vector<1x8x8xf32> to vector<1x8xf32>
    %54 = vector.shape_cast %53 : vector<1x8xf32> to vector<1x8x1xf32>
    %55 = vector.broadcast %54 : vector<1x8x1xf32> to vector<1x8x8xf32>
    %56 = arith.divf %52, %55 : vector<1x8x8xf32>
    %c0_23 = arith.constant 0 : index
    %c1 = arith.constant 1 : index
    %c0_24 = arith.constant 0 : index
    %c0_25 = arith.constant 0 : index
    %57 = vector.load %arg8[%c0_23, %c1, %c0_24, %c0_25] : memref<1x4x8x8xf32, #tpu.memory_space<vmem>>, vector<1x1x8x8xf32>
    %58 = vector.shape_cast %57 : vector<1x1x8x8xf32> to vector<1x8x8xf32>
    %59 = vector.shape_cast %56 : vector<1x8x8xf32> to vector<1x1x8x8xf32>
    tpu.vector_store %arg8[%c0_23, %c1, %c0_24, %c0_25], %59 {strides = array<i32>} : memref<1x4x8x8xf32, #tpu.memory_space<vmem>>, vector<1x1x8x8xf32>,
    %60 = arith.truncf %56 : vector<1x8x8xf32> to vector<1x8x8xbf16>
    "tpu.trace_start"() <{level = 10 : i32, message = "bqk,bkd->bqd"}> : () -> ()
    %cst_26 = arith.constant dense<0.000000e+00> : vector<1x8x32xf32>
    %61 = tpu.matmul %60, %44, %cst_26 {dimension_numbers = #tpu.dot_dimension_numbers<[2], [1], [1], [2], [0, 0, 0, 1, 1, 2], [0], [0]>} : vector<1x8x8xbf16>, vector<1x8x32xbf16>, vector<1x8x32xf32> -> vector<1x8x32xf32>
    "tpu.trace_stop"() : () -> ()
    %62 = vector.shape_cast %61 : vector<1x8x32xf32> to vector<8x32xf32>
    %c0_27 = arith.constant 0 : index
    %c32 = arith.constant 32 : index
    %63 = vector.load %arg9[%c0_27, %c32] : memref<8x128xf32, #tpu.memory_space<vmem>>, vector<8x32xf32>
    tpu.vector_store %arg9[%c0_27, %c32], %62 {strides = array<i32>} : memref<8x128xf32, #tpu.memory_space<vmem>>, vector<8x32xf32>,
    %64 = vector.extract_strided_slice %12 {offsets = [0, 0, 64], sizes = [1, 8, 32], strides = [1, 1, 1]} : vector<1x8x128xbf16> to vector<1x8x32xbf16>
    %65 = vector.extract_strided_slice %14 {offsets = [0, 0, 64], sizes = [1, 8, 32], strides = [1, 1, 1]} : vector<1x8x128xbf16> to vector<1x8x32xbf16>
    %66 = vector.extract_strided_slice %16 {offsets = [0, 0, 64], sizes = [1, 8, 32], strides = [1, 1, 1]} : vector<1x8x128xbf16> to vector<1x8x32xbf16>
    "tpu.trace_start"() <{level = 10 : i32, message = "bqd,bkd->bqk"}> : () -> ()
    %cst_28 = arith.constant dense<0.000000e+00> : vector<1x8x8xf32>
    %67 = tpu.matmul %64, %65, %cst_28 {dimension_numbers = #tpu.dot_dimension_numbers<[2], [2], [1], [1], [0, 0, 0, 1, 1, 1], [0], [0]>} : vector<1x8x32xbf16>, vector<1x8x32xbf16>, vector<1x8x8xf32> -> vector<1x8x8xf32>
    %cst_29 = arith.constant -1.000000e+09 : f32
    "tpu.trace_stop"() : () -> ()
    %68 = vector.broadcast %cst_29 : f32 to vector<1x8x8xf32>
    %69 = arith.select %19, %68, %67 : vector<1x8x8xi1>, vector<1x8x8xf32>
    %cst_30 = arith.constant dense<0xFF800000> : vector<1x8xf32>
    %70 = vector.multi_reduction <maximumf>, %69, %cst_30 [2] : vector<1x8x8xf32> to vector<1x8xf32>
    %71 = vector.shape_cast %70 : vector<1x8xf32> to vector<1x8x1xf32>
    %72 = vector.broadcast %71 : vector<1x8x1xf32> to vector<1x8x8xf32>
    %73 = arith.subf %69, %72 : vector<1x8x8xf32>
    %74 = math.exp %73 : vector<1x8x8xf32>
    %cst_31 = arith.constant dense<0.000000e+00> : vector<1x8xf32>
    %75 = vector.multi_reduction <add>, %74, %cst_31 [2] : vector<1x8x8xf32> to vector<1x8xf32>
    %76 = vector.shape_cast %75 : vector<1x8xf32> to vector<1x8x1xf32>
    %77 = vector.broadcast %76 : vector<1x8x1xf32> to vector<1x8x8xf32>
    %78 = arith.divf %74, %77 : vector<1x8x8xf32>
    %c0_32 = arith.constant 0 : index
    %c2 = arith.constant 2 : index
    %c0_33 = arith.constant 0 : index
    %c0_34 = arith.constant 0 : index
    %79 = vector.load %arg8[%c0_32, %c2, %c0_33, %c0_34] : memref<1x4x8x8xf32, #tpu.memory_space<vmem>>, vector<1x1x8x8xf32>
    %80 = vector.shape_cast %79 : vector<1x1x8x8xf32> to vector<1x8x8xf32>
    %81 = vector.shape_cast %78 : vector<1x8x8xf32> to vector<1x1x8x8xf32>
    tpu.vector_store %arg8[%c0_32, %c2, %c0_33, %c0_34], %81 {strides = array<i32>} : memref<1x4x8x8xf32, #tpu.memory_space<vmem>>, vector<1x1x8x8xf32>,
    %82 = arith.truncf %78 : vector<1x8x8xf32> to vector<1x8x8xbf16>
    "tpu.trace_start"() <{level = 10 : i32, message = "bqk,bkd->bqd"}> : () -> ()
    %cst_35 = arith.constant dense<0.000000e+00> : vector<1x8x32xf32>
    %83 = tpu.matmul %82, %66, %cst_35 {dimension_numbers = #tpu.dot_dimension_numbers<[2], [1], [1], [2], [0, 0, 0, 1, 1, 2], [0], [0]>} : vector<1x8x8xbf16>, vector<1x8x32xbf16>, vector<1x8x32xf32> -> vector<1x8x32xf32>
    "tpu.trace_stop"() : () -> ()
    %84 = vector.shape_cast %83 : vector<1x8x32xf32> to vector<8x32xf32>
    %c0_36 = arith.constant 0 : index
    %c64 = arith.constant 64 : index
    %85 = vector.load %arg9[%c0_36, %c64] : memref<8x128xf32, #tpu.memory_space<vmem>>, vector<8x32xf32>
    tpu.vector_store %arg9[%c0_36, %c64], %84 {strides = array<i32>} : memref<8x128xf32, #tpu.memory_space<vmem>>, vector<8x32xf32>,
    %86 = vector.extract_strided_slice %12 {offsets = [0, 0, 96], sizes = [1, 8, 32], strides = [1, 1, 1]} : vector<1x8x128xbf16> to vector<1x8x32xbf16>
    %87 = vector.extract_strided_slice %14 {offsets = [0, 0, 96], sizes = [1, 8, 32], strides = [1, 1, 1]} : vector<1x8x128xbf16> to vector<1x8x32xbf16>
    %88 = vector.extract_strided_slice %16 {offsets = [0, 0, 96], sizes = [1, 8, 32], strides = [1, 1, 1]} : vector<1x8x128xbf16> to vector<1x8x32xbf16>
    "tpu.trace_start"() <{level = 10 : i32, message = "bqd,bkd->bqk"}> : () -> ()
    %cst_37 = arith.constant dense<0.000000e+00> : vector<1x8x8xf32>
    %89 = tpu.matmul %86, %87, %cst_37 {dimension_numbers = #tpu.dot_dimension_numbers<[2], [2], [1], [1], [0, 0, 0, 1, 1, 1], [0], [0]>} : vector<1x8x32xbf16>, vector<1x8x32xbf16>, vector<1x8x8xf32> -> vector<1x8x8xf32>
    %cst_38 = arith.constant -1.000000e+09 : f32
    "tpu.trace_stop"() : () -> ()
    %90 = vector.broadcast %cst_38 : f32 to vector<1x8x8xf32>
    %91 = arith.select %19, %90, %89 : vector<1x8x8xi1>, vector<1x8x8xf32>
    %cst_39 = arith.constant dense<0xFF800000> : vector<1x8xf32>
    %92 = vector.multi_reduction <maximumf>, %91, %cst_39 [2] : vector<1x8x8xf32> to vector<1x8xf32>
    %93 = vector.shape_cast %92 : vector<1x8xf32> to vector<1x8x1xf32>
    %94 = vector.broadcast %93 : vector<1x8x1xf32> to vector<1x8x8xf32>
    %95 = arith.subf %91, %94 : vector<1x8x8xf32>
    %96 = math.exp %95 : vector<1x8x8xf32>
    %cst_40 = arith.constant dense<0.000000e+00> : vector<1x8xf32>
    %97 = vector.multi_reduction <add>, %96, %cst_40 [2] : vector<1x8x8xf32> to vector<1x8xf32>
    %98 = vector.shape_cast %97 : vector<1x8xf32> to vector<1x8x1xf32>
    %99 = vector.broadcast %98 : vector<1x8x1xf32> to vector<1x8x8xf32>
    %100 = arith.divf %96, %99 : vector<1x8x8xf32>
    %c0_41 = arith.constant 0 : index
    %c3 = arith.constant 3 : index
    %c0_42 = arith.constant 0 : index
    %c0_43 = arith.constant 0 : index
    %101 = vector.load %arg8[%c0_41, %c3, %c0_42, %c0_43] : memref<1x4x8x8xf32, #tpu.memory_space<vmem>>, vector<1x1x8x8xf32>
    %102 = vector.shape_cast %101 : vector<1x1x8x8xf32> to vector<1x8x8xf32>
    %103 = vector.shape_cast %100 : vector<1x8x8xf32> to vector<1x1x8x8xf32>
    tpu.vector_store %arg8[%c0_41, %c3, %c0_42, %c0_43], %103 {strides = array<i32>} : memref<1x4x8x8xf32, #tpu.memory_space<vmem>>, vector<1x1x8x8xf32>,
    %104 = arith.truncf %100 : vector<1x8x8xf32> to vector<1x8x8xbf16>
    "tpu.trace_start"() <{level = 10 : i32, message = "bqk,bkd->bqd"}> : () -> ()
    %cst_44 = arith.constant dense<0.000000e+00> : vector<1x8x32xf32>
    %105 = tpu.matmul %104, %88, %cst_44 {dimension_numbers = #tpu.dot_dimension_numbers<[2], [1], [1], [2], [0, 0, 0, 1, 1, 2], [0], [0]>} : vector<1x8x8xbf16>, vector<1x8x32xbf16>, vector<1x8x32xf32> -> vector<1x8x32xf32>
    "tpu.trace_stop"() : () -> ()
    %106 = vector.shape_cast %105 : vector<1x8x32xf32> to vector<8x32xf32>
    %c0_45 = arith.constant 0 : index
    %c96 = arith.constant 96 : index
    %107 = vector.load %arg9[%c0_45, %c96] : memref<8x128xf32, #tpu.memory_space<vmem>>, vector<8x32xf32>
    tpu.vector_store %arg9[%c0_45, %c96], %106 {strides = array<i32>} : memref<8x128xf32, #tpu.memory_space<vmem>>, vector<8x32xf32>,
    %c0_46 = arith.constant 0 : index
    %c0_47 = arith.constant 0 : index
    %108 = vector.load %arg9[%c0_46, %c0_47] : memref<8x128xf32, #tpu.memory_space<vmem>>, vector<8x128xf32>
    %109 = arith.truncf %108 : vector<8x128xf32> to vector<8x128xbf16>
    %c0_48 = arith.constant 0 : index
    %c0_49 = arith.constant 0 : index
    %110 = vector.load %arg4[%c0_48, %c0_49] : memref<128x128xbf16, #tpu.memory_space<vmem>>, vector<128x128xbf16>
    %cst_50 = arith.constant dense<0.000000e+00> : vector<8x128xf32>
    %111 = tpu.matmul %109, %110, %cst_50 {dimension_numbers = #tpu.dot_dimension_numbers<[1], [0], [0], [1], [0, 0, 1, 1], [], []>} : vector<8x128xbf16>, vector<128x128xbf16>, vector<8x128xf32> -> vector<8x128xf32>
    %112 = arith.addf %111, %5 : vector<8x128xf32>
    %cst_51 = arith.constant dense<0.000000e+00> : vector<8xf32>
    %113 = vector.multi_reduction <add>, %112, %cst_51 [1] : vector<8x128xf32> to vector<8xf32>
    %114 = vector.shape_cast %113 : vector<8xf32> to vector<8x1xf32>
    %cst_52 = arith.constant 1.280000e+02 : f32
    %115 = vector.broadcast %cst_52 : f32 to vector<8x1xf32>
    %116 = arith.divf %114, %115 : vector<8x1xf32>
    %117 = vector.broadcast %116 : vector<8x1xf32> to vector<8x128xf32>
    %118 = arith.subf %112, %117 : vector<8x128xf32>
    %119 = arith.mulf %118, %118 : vector<8x128xf32>
    %cst_53 = arith.constant dense<0.000000e+00> : vector<8xf32>
    %120 = vector.multi_reduction <add>, %119, %cst_53 [1] : vector<8x128xf32> to vector<8xf32>
    %121 = vector.shape_cast %120 : vector<8xf32> to vector<8x1xf32>
    %cst_54 = arith.constant 1.280000e+02 : f32
    %122 = vector.broadcast %cst_54 : f32 to vector<8x1xf32>
    %123 = arith.divf %121, %122 : vector<8x1xf32>
    %cst_55 = arith.constant 9.99999974E-6 : f32
    %124 = vector.broadcast %cst_55 : f32 to vector<8x1xf32>
    %125 = arith.addf %123, %124 : vector<8x1xf32>
    %126 = math.rsqrt %125 : vector<8x1xf32>
    %127 = vector.broadcast %126 : vector<8x1xf32> to vector<8x128xf32>
    %128 = arith.mulf %118, %127 : vector<8x128xf32>
    %129 = arith.truncf %128 : vector<8x128xf32> to vector<8x128xbf16>
    %c0_56 = arith.constant 0 : index
    %c0_57 = arith.constant 0 : index
    %130 = vector.load %arg5[%c0_56, %c0_57] : memref<128x512xbf16, #tpu.memory_space<vmem>>, vector<128x512xbf16>
    %cst_58 = arith.constant dense<0.000000e+00> : vector<8x512xf32>
    %131 = tpu.matmul %129, %130, %cst_58 {dimension_numbers = #tpu.dot_dimension_numbers<[1], [0], [0], [1], [0, 0, 1, 1], [], []>} : vector<8x128xbf16>, vector<128x512xbf16>, vector<8x512xf32> -> vector<8x512xf32>
    %cst_59 = arith.constant 0.000000e+00 : f32
    %132 = vector.broadcast %cst_59 : f32 to vector<8x512xf32>
    %133 = arith.maximumf %131, %132 : vector<8x512xf32>
    %134 = arith.truncf %133 : vector<8x512xf32> to vector<8x512xbf16>
    %c0_60 = arith.constant 0 : index
    %c0_61 = arith.constant 0 : index
    %135 = vector.load %arg6[%c0_60, %c0_61] : memref<512x128xbf16, #tpu.memory_space<vmem>>, vector<512x128xbf16>
    %cst_62 = arith.constant dense<0.000000e+00> : vector<8x128xf32>
    %136 = tpu.matmul %134, %135, %cst_62 {dimension_numbers = #tpu.dot_dimension_numbers<[1], [0], [0], [1], [0, 0, 1, 1], [], []>} : vector<8x512xbf16>, vector<512x128xbf16>, vector<8x128xf32> -> vector<8x128xf32>
    %137 = arith.addf %136, %128 : vector<8x128xf32>
    %cst_63 = arith.constant dense<0.000000e+00> : vector<8xf32>
    %138 = vector.multi_reduction <add>, %137, %cst_63 [1] : vector<8x128xf32> to vector<8xf32>
    %139 = vector.shape_cast %138 : vector<8xf32> to vector<8x1xf32>
    %cst_64 = arith.constant 1.280000e+02 : f32
    %140 = vector.broadcast %cst_64 : f32 to vector<8x1xf32>
    %141 = arith.divf %139, %140 : vector<8x1xf32>
    %142 = vector.broadcast %141 : vector<8x1xf32> to vector<8x128xf32>
    %143 = arith.subf %137, %142 : vector<8x128xf32>
    %144 = arith.mulf %143, %143 : vector<8x128xf32>
    %cst_65 = arith.constant dense<0.000000e+00> : vector<8xf32>
    %145 = vector.multi_reduction <add>, %144, %cst_65 [1] : vector<8x128xf32> to vector<8xf32>
    %146 = vector.shape_cast %145 : vector<8xf32> to vector<8x1xf32>
    %cst_66 = arith.constant 1.280000e+02 : f32
    %147 = vector.broadcast %cst_66 : f32 to vector<8x1xf32>
    %148 = arith.divf %146, %147 : vector<8x1xf32>
    %cst_67 = arith.constant 9.99999974E-6 : f32
    %149 = vector.broadcast %cst_67 : f32 to vector<8x1xf32>
    %150 = arith.addf %148, %149 : vector<8x1xf32>
    %151 = math.rsqrt %150 : vector<8x1xf32>
    %152 = vector.broadcast %151 : vector<8x1xf32> to vector<8x128xf32>
    %153 = arith.mulf %143, %152 : vector<8x128xf32>
    %154 = vector.shape_cast %153 : vector<8x128xf32> to vector<1x8x128xf32>
    %c0_68 = arith.constant 0 : index
    %c0_69 = arith.constant 0 : index
    %c0_70 = arith.constant 0 : index
    %155 = vector.load %arg7[%c0_68, %c0_69, %c0_70] : memref<1x8x128xf32, #tpu.memory_space<vmem>>, vector<1x8x128xf32>
    tpu.vector_store %arg7[%c0_68, %c0_69, %c0_70], %154 {strides = array<i32>} : memref<1x8x128xf32, #tpu.memory_space<vmem>>, vector<1x8x128xf32>,
    return
  }
  func.func @transform_0(%arg0: i32) -> (i32, i32, i32) {
    %c0_i32 = arith.constant 0 : i32
    %c0_i32_0 = arith.constant 0 : i32
    %c0_i32_1 = arith.constant 0 : i32
    return %arg0, %c0_i32, %c0_i32_0 : i32, i32, i32
  }
  func.func @transform_1(%arg0: i32) -> (i32, i32, i32) {
    %c0_i32 = arith.constant 0 : i32
    %c0_i32_0 = arith.constant 0 : i32
    %c0_i32_1 = arith.constant 0 : i32
    return %arg0, %c0_i32, %c0_i32_0 : i32, i32, i32
  }
  func.func @transform_2(%arg0: i32) -> (i32, i32) {
    %c0_i32 = arith.constant 0 : i32
    %c0_i32_0 = arith.constant 0 : i32
    %c0_i32_1 = arith.constant 0 : i32
    return %c0_i32, %c0_i32_0 : i32, i32
  }
  func.func @transform_3(%arg0: i32) -> (i32, i32) {
    %c0_i32 = arith.constant 0 : i32
    %c0_i32_0 = arith.constant 0 : i32
    %c0_i32_1 = arith.constant 0 : i32
    return %c0_i32, %c0_i32_0 : i32, i32
  }
  func.func @transform_4(%arg0: i32) -> (i32, i32) {
    %c0_i32 = arith.constant 0 : i32
    %c0_i32_0 = arith.constant 0 : i32
    %c0_i32_1 = arith.constant 0 : i32
    return %c0_i32, %c0_i32_0 : i32, i32
  }
  func.func @transform_5(%arg0: i32) -> (i32, i32) {
    %c0_i32 = arith.constant 0 : i32
    %c0_i32_0 = arith.constant 0 : i32
    %c0_i32_1 = arith.constant 0 : i32
    return %c0_i32, %c0_i32_0 : i32, i32
  }
  func.func @transform_6(%arg0: i32) -> (i32, i32, i32) {
    %c0_i32 = arith.constant 0 : i32
    %c0_i32_0 = arith.constant 0 : i32
    %c0_i32_1 = arith.constant 0 : i32
    return %arg0, %c0_i32, %c0_i32_0 : i32, i32, i32
  }
  func.func @transform_7(%arg0: i32) -> (i32, i32, i32, i32) {
    %c0_i32 = arith.constant 0 : i32
    %c0_i32_0 = arith.constant 0 : i32
    %c0_i32_1 = arith.constant 0 : i32
    %c0_i32_2 = arith.constant 0 : i32
    return %arg0, %c0_i32, %c0_i32_0, %c0_i32_1 : i32, i32, i32, i32
  }
}

</mosaic_0001>

<bundles_post_ra>
// kernel: tpu_custom_call.1
= control target key start
LH: loop header
LB: loop body
LE: loop exit
PB: predicated region body
PF: predicated region fallthrough
CT: control target
= control target key end

     0   :  { %s3487_s0 = inlined_call_operand.hbm [shape: f32[2,8,128], index: 0, kind: input, shape index: {}]   ;;  %s3488_s1 = inlined_call_operand.hbm [shape: s8[2,8,8], index: 1, kind: input, shape index: {}]   ;;  %s3489_s2 = inlined_call_operand.hbm [shape: bf16[128,512], index: 2, kind: input, shape index: {}]   ;;  %s3490_s3 = inlined_call_operand.hbm [shape: bf16[128,128], index: 3, kind: input, shape index: {}]   ;;  %s3491_s4 = inlined_call_operand.hbm [shape: bf16[128,512], index: 4, kind: input, shape index: {}]   ;;  %s3492_s5 = inlined_call_operand.hbm [shape: bf16[512,128], index: 5, kind: input, shape index: {}]   ;;  %s3493_s6 = inlined_call_operand.hbm [shape: f32[2,8,128], index: 6, kind: output, shape index: {0}]   ;;  %s3494_s7 = inlined_call_operand.hbm [shape: f32[2,4,8,8], index: 7, kind: output, shape index: {1}]  }
   0x1   :  { %3500 = sst [smem:[#allocation24_spill]] %s3487_s0 }
   0x2   :  { %3501 = sst [smem:[#allocation25_spill]] %s3489_s2 }
   0x3   :  { %3502 = sst [smem:[#allocation26_spill]] %s3490_s3 }
   0x4   :  { %13 = vsyncpa [#allocation4], 0 }
   0x5   :  { %15 = vsyncpa [#allocation4 + $0x1], 0 }
   0x6   :  { %16 = vsyncpa [#allocation7], 0 }
   0x7   :  { %18 = vsyncpa [#allocation7 + $0x1], 0 }
   0x8   :  { %19 = vsyncpa [#allocation10], 0 }
   0x9   :  { %20 = vsyncpa [#allocation13], 0 }
   0xa   :  { %21 = vsyncpa [#allocation5], 0 }
   0xb   :  { %23 = vsyncpa [#allocation5 + $0x1], 0 }
   0xc   :  { %24 = vsyncpa [#allocation16], 0 }
   0xd   :  { %26 = vsyncpa [#allocation16 + $0x1], 0  ;;  %s2998_s24 = smov 0   ;;  %s3000_s25 = smov 0  }
   0xe   :  { %s3002_s26 = smov 0   ;;  %s3004_s27 = smov 0  }
   0xf LB: > { %s2938_s28 = smov [#allocation8]   ;;  %s3019_s30 = sadd.s32 4294967295, %s2936_s27   ;;  %s2936_s27 = sphi %s3004_s27, %s3533_s27   ;;  %s2932_s26 = sphi %s3002_s26, %s3532_s26   ;;  %s2928_s25 = sphi %s3000_s25, %s3531_s25   ;;  %s2924_s24 = sphi %s2998_s24, %s3530_s24  }
  0x10   : > { %s237_s29 = sshll.u32 %s2938_s28, 4  ;;  %p2106_p0 = scmp.ge.s32.totalorder %s2936_s27, 1  ;;  %s3024_s29 = int_to_ptr.vmem [resolvable:$true] %s237_s29 }
  0x11   : > { %p3495_p1 = scmp.eq.s32.totalorder %s3019_s30, 0  ;;  %p225_p2 = scmp.lt.s32.totalorder %s2936_s27, 3 }
  0x12   : > { %s2939_s9 = smov [#allocation9]   ;;  %s2940_s12 = smov [#allocation11]  }
  0x13   : > { %p3026_p3 = pnand %p2106_p0, %p225_p2  ;;  %s250_s10 = sshll.u32 %s2939_s9, 4  ;;  %s3039_s10 = int_to_ptr.vmem [resolvable:$true] %s250_s10 }
  0x14   : > { %s3041_s13 = sshll.u32 %s2940_s12, 4  ;;  %s3505_s2 = sld [smem:[#allocation25_spill]]  ;;  %s264_s13 = int_to_ptr.vmem [resolvable:$true] %s3041_s13 }
  0x15   : > { %s3503_s8 = scalar_select %p3026_p3, 1, 0 }
  0x16   : > { %p2409_p5 = pneg %p3026_p3 }
  0x18   : > { %p3035_p6 = pnand %p2409_p5, %p3495_p1 }
  0x1a   : > { %s2650_s16 = scalar_lea.hbm %s3505_s2, 4096  ;;  %p3051_p8 = pneg %p3035_p6 }
  0x1b   : > { %p2651_p7 = scmp.ne.s32.totalorder %s3505_s2, %s2650_s16  ;;  %p2657_p11 = scmp.lt.u32.totalorder %s2650_s16, %s3505_s2 }
  0x1d   : > { %p2653_p9 = pnand %p3051_p8, %p2651_p7 }
  0x1f   : > { %p2654_p10 = pneg %p2653_p9 }
  0x21   : > { %p2659_p12 = pnand %p2657_p11, %p2654_p10 }
  0x23   : > { %2662 = shalt.err (!%p2659_p12)
}
  0x24   : > { %s2663_s22 = scalar_lea.vmem %s3024_s29, 4096  ;;  %p2671_p5 = scmp.lt.s32.totalorder %s3024_s29, %s3024_s29 }
  0x25   : > { %p2664_p13 = scmp.ne.s32.totalorder %s3024_s29, %s2663_s22  ;;  %p2672_p4 = scmp.lt.s32.totalorder %s2663_s22, %s2663_s22 }
  0x27   : > { %p2666_p0 = pnand %p2664_p13, %p3051_p8  ;;  %p2673_p7 = por %p2672_p4, %p2671_p5 }
  0x29   : > { %p2667_p2 = pneg %p2666_p0 }
  0x2b   : > { %p2674_p9 = pnand %p2673_p7, %p2667_p2 }
  0x2d   : > { %2677 = shalt.err (!%p2674_p9)
}
  0x2e   : > { %s2941_s23 = smov 256   ;;  %s2942_s28 = smov 16  }
  0x2f   : > { %2412 = dma.hbm_to_vmem [thread:$0]  (!%p3035_p6), %s3505_s2, 4096, %s3024_s29, [#allocation7], %s2941_s23, %s2941_s23, %s2942_s28  }
  0x30   : > { %s3507_s3 = sld [smem:[#allocation26_spill]] }
  0x36   : > { %s2678_s16 = scalar_lea.hbm %s3507_s3, 1024 }
  0x37   : > { %p2679_p4 = scmp.ne.s32.totalorder %s3507_s3, %s2678_s16  ;;  %p2685_p12 = scmp.lt.u32.totalorder %s2678_s16, %s3507_s3 }
  0x39   : > { %p2681_p10 = pnand %p2679_p4, %p3051_p8 }
  0x3b   : > { %p2682_p11 = pneg %p2681_p10 }
  0x3d   : > { %p2687_p13 = pnand %p2685_p12, %p2682_p11 }
  0x3f   : > { %2690 = shalt.err (!%p2687_p13)
}
  0x40   : > { %s2691_s29 = scalar_lea.vmem %s3039_s10, 1024  ;;  %p2699_p7 = scmp.lt.s32.totalorder %s3039_s10, %s3039_s10 }
  0x41   : > { %p2692_p0 = scmp.ne.s32.totalorder %s3039_s10, %s2691_s29  ;;  %p2700_p9 = scmp.lt.s32.totalorder %s2691_s29, %s2691_s29 }
  0x43   : > { %p2694_p2 = pnand %p2692_p0, %p3051_p8  ;;  %p2701_p4 = por %p2700_p9, %p2699_p7 }
  0x45   : > { %p2695_p5 = pneg %p2694_p2 }
  0x47   : > { %p2702_p10 = pnand %p2701_p4, %p2695_p5 }
  0x49   : > { %2705 = shalt.err (!%p2702_p10)
}
  0x4a   : > { %s3497_s22 = smov 64   ;;  %s2944_s9 = smov 4  }
  0x4b   : > { %2415 = dma.hbm_to_vmem [thread:$0]  (!%p3035_p6), %s3507_s3, 1024, %s3039_s10, [#allocation10], %s3497_s22, %s3497_s22, %s2944_s9  }
  0x4c   : > { %s2706_s17 = scalar_lea.hbm %s3491_s4, 4096 }
  0x4d   : > { %p2707_p11 = scmp.ne.s32.totalorder %s3491_s4, %s2706_s17  ;;  %p2713_p0 = scmp.lt.u32.totalorder %s2706_s17, %s3491_s4 }
  0x4f   : > { %p2709_p12 = pnand %p2707_p11, %p3051_p8 }
  0x51   : > { %p2710_p13 = pneg %p2709_p12 }
  0x53   : > { %p2715_p2 = pnand %p2713_p0, %p2710_p13 }
  0x55   : > { %2718 = shalt.err (!%p2715_p2)
}
  0x56   : > { %s2719_s12 = scalar_lea.vmem %s264_s13, 4096  ;;  %p2727_p4 = scmp.lt.s32.totalorder %s264_s13, %s264_s13 }
  0x57   : > { %p2720_p5 = scmp.ne.s32.totalorder %s264_s13, %s2719_s12  ;;  %p2728_p10 = scmp.lt.s32.totalorder %s2719_s12, %s2719_s12 }
  0x59   : > { %p2722_p7 = pnand %p2720_p5, %p3051_p8  ;;  %p2729_p1 = por %p2728_p10, %p2727_p4 }
  0x5b   : > { %p2723_p9 = pneg %p2722_p7 }
  0x5d   : > { %p2730_p3 = pnand %p2729_p1, %p2723_p9 }
  0x5f   : > { %2733 = shalt.err (!%p2730_p3)
}
  0x60   : > { %2418 = dma.hbm_to_vmem [thread:$0]  (!%p3035_p6), %s3491_s4, 4096, %s264_s13, [#allocation10], %s2941_s23, %s2941_s23, %s2942_s28  }
  0x61   : > { %s2945_s15 = smov [#allocation12]   ;;  %s2734_s20 = scalar_lea.hbm %s3492_s5, 4096 }
  0x62   : > { %s276_s16 = sshll.u32 %s2945_s15, 4  ;;  %p2735_p1 = scmp.ne.s32.totalorder %s3492_s5, %s2734_s20  ;;  %s277_s16 = int_to_ptr.vmem [resolvable:$true] %s276_s16 }
  0x63   : > { %p2741_p12 = scmp.lt.u32.totalorder %s2734_s20, %s3492_s5 }
  0x64   : > { %p2737_p3 = pnand %p2735_p1, %p3051_p8 }
  0x66   : > { %p2738_p11 = pneg %p2737_p3 }
  0x68   : > { %p2743_p13 = pnand %p2741_p12, %p2738_p11 }
  0x6a   : > { %2746 = shalt.err (!%p2743_p13)
}
  0x6b   : > { %s2747_s13 = scalar_lea.vmem %s277_s16, 4096  ;;  %p2755_p7 = scmp.lt.s32.totalorder %s277_s16, %s277_s16 }
  0x6c   : > { %p2748_p0 = scmp.ne.s32.totalorder %s277_s16, %s2747_s13  ;;  %p2756_p9 = scmp.lt.s32.totalorder %s2747_s13, %s2747_s13 }
  0x6e   : > { %p2750_p2 = pnand %p2748_p0, %p3051_p8  ;;  %p2757_p4 = por %p2756_p9, %p2755_p7 }
  0x70   : > { %p2751_p5 = pneg %p2750_p2 }
  0x72   : > { %p2758_p10 = pnand %p2757_p4, %p2751_p5 }
  0x74   : > { %2761 = shalt.err (!%p2758_p10)
}
  0x75   : > { %s3508_s23 = smov 64   ;;  %s2105_s11 = sadd.s32 4294967294, %s2936_s27  }
  0x76   : > { %2421 = dma.hbm_to_vmem [thread:$0]  (!%p3035_p6), %s3492_s5, 4096, %s277_s16, [#allocation13], %s3508_s23, %s3508_s23, %s2944_s9  }
  0x77   : > { %s3146_s19 = sadd.s32 1, %s2936_s27   ;;  %s39_s14 = sadd.s32 1, %s2932_s26 }
  0x78   : > { %s36_s10 = ssub.s32 %s2936_s27, %s3146_s19  ;;  %p46_p1 = scmp.ne.s32.totalorder %s2932_s26, %s2928_s25 }
  0x79   : > { %p37_p8 = scmp.eq.s32.totalorder %s36_s10, 0  ;;  %p47_p3 = scmp.eq.s32.totalorder %s2936_s27, 0 }
  0x7a   : > { %p52_p11 = scmp.ne.s32.totalorder %s2928_s25, %s2924_s24  ;;  %p3510_p13 = scmp.eq.s32.totalorder %s3019_s30, 0 }
  0x7b   : > { %s3157_s15 = scalar_select %p37_p8, %s2932_s26, %s39_s14  }
  0x7c   : > { %p3159_p12 = por %p47_p3, %p46_p1  ;;  %p3165_p6 = por %p3510_p13, %p52_p11 }
  0x7d   : > { %p186_p0 = scmp.eq.s32.totalorder %s3019_s30, 1  ;;  %p192_p2 = scmp.eq.s32.totalorder %s2105_s11, 1 }
  0x7e   : > { %s3511_s9 = scalar_select %p3165_p6, 1, 0 }
  0x7f   : > { %p2440_p5 = scmp.lt.s32.totalorder %s2936_s27, 2  ;;  %s3172_s16 = sand.u32 1, %s2932_s26  }
  0x80   : > { %p3174_p7 = por %p186_p0, %p46_p1  ;;  %p3178_p9 = por %p192_p2, %p52_p11 }
  0x81   : > { %s2112_s21 = sshll.u32 %s3172_s16, 3  ;;  %s2113_s29 = sshll.u32 %s2936_s27, 7 }
  0x82   : > { %s3512_s18 = scalar_select %p3174_p7, 1, 0 }
  0x83   : > { %s3513_s20 = scalar_select %p3178_p9, 1, 0 }
  0x84   : > { %s3514_s0 = sld [smem:[#allocation24_spill]]  ;;  %s294_s28 = scalar_lea.vmem [#allocation3], %s2112_s21 }
  0x85   : > { %s301_s22 = sshll.u32 %s294_s28, 4  ;;  %p3193_p4 = pnand %p2440_p5, %p3159_p12  ;;  %s3189_s22 = int_to_ptr.vmem [resolvable:$true] %s301_s22 }
  0x86   : > { %s2114_s14 = sshll.u32 %s3172_s16, 1  ;;  %s291_s12 = scalar_lea.sflag [#allocation4], %s3172_s16 }
  0x87   : > { %p2764_p8 = pneg %p3193_p4 }
  0x8a   : > { %s3187_s23 = scalar_lea.hbm %s3514_s0, %s2113_s29  ;;  %s2767_s17 = scalar_lea.hbm %s3514_s0, 256 }
  0x8b   : > { %s2762_s29 = scalar_lea.hbm %s3187_s23, 128  ;;  %p2768_p11 = scmp.lt.u32.totalorder %s3187_s23, %s3514_s0 }
  0x8c   : > { %p2763_p10 = scmp.ne.s32.totalorder %s3187_s23, %s2762_s29  ;;  %p2769_p12 = scmp.lt.u32.totalorder %s2767_s17, %s2762_s29 }
  0x8d   : > { %p2771_p0 = scmp.lt.u32.totalorder %s2762_s29, %s3187_s23 }
  0x8e   : > { %p2765_p1 = pnand %p2764_p8, %p2763_p10  ;;  %p2770_p13 = por %p2769_p12, %p2768_p11 }
  0x90   : > { %p2766_p3 = pneg %p2765_p1  ;;  %p2772_p2 = por %p2771_p0, %p2770_p13 }
  0x92   : > { %p2773_p5 = pnand %p2772_p2, %p2766_p3 }
  0x94   : > { %2776 = shalt.err (!%p2773_p5)
}
  0x95   : > { %s2777_s10 = scalar_lea.vmem %s3189_s22, 128  ;;  %s2946_s21 = smov [#allocation3]  }
  0x96   : > { %p2778_p10 = scmp.ne.s32.totalorder %s3189_s22, %s2777_s10  ;;  %s2782_s13 = sshll.u32 %s2946_s21, 4  ;;  %s2783_s13 = int_to_ptr.vmem [resolvable:$false] %s2782_s13 }
  0x97   : > { %s2784_s2 = scalar_lea.vmem %s2783_s13, 256  ;;  %p2785_p7 = scmp.lt.s32.totalorder %s3189_s22, %s2783_s13 }
  0x98   : > { %p2780_p1 = pnand %p2778_p10, %p2764_p8  ;;  %p2786_p11 = scmp.lt.s32.totalorder %s2784_s2, %s2777_s10 }
  0x9a   : > { %p2781_p9 = pneg %p2780_p1  ;;  %p2787_p12 = por %p2786_p11, %p2785_p7 }
  0x9c   : > { %p2788_p13 = pnand %p2787_p12, %p2781_p9 }
  0x9e   : > { %2791 = shalt.err (!%p2788_p13)
}
  0x9f   : > { %2425 = dma.hbm_to_vmem [thread:$0]  (!%p3193_p4), %s3187_s23, 128, %s3189_s22, %s291_s12  }
  0xa0   : > { %s2115_s29 = sshll.u32 %s2936_s27, 5  ;;  %s312_s10 = scalar_lea.vmem [#allocation6], %s2114_s14 }
  0xa1   : > { %s3229_s21 = scalar_lea.hbm %s3488_s1, %s2115_s29  ;;  %s319_s13 = sshll.u32 %s312_s10, 4  ;;  %s320_s13 = int_to_ptr.vmem [resolvable:$true] %s319_s13 }
  0xa2   : > { %s3516_s2 = sand.u32 1, %s2936_s27   ;;  %s2792_s3 = scalar_lea.hbm %s3229_s21, 32 }
  0xa3   : > { %s309_s0 = scalar_lea.sflag [#allocation7], %s3516_s2  ;;  %p2793_p7 = scmp.ne.s32.totalorder %s3229_s21, %s2792_s3 }
  0xa4   : > { %s2797_s12 = scalar_lea.hbm %s3488_s1, 64  ;;  %p2798_p0 = scmp.lt.u32.totalorder %s3229_s21, %s3488_s1 }
  0xa5   : > { %p2795_p9 = pnand %p2793_p7, %p2764_p8  ;;  %p2799_p2 = scmp.lt.u32.totalorder %s2797_s12, %s2792_s3 }
  0xa6   : > { %p2801_p10 = scmp.lt.u32.totalorder %s2792_s3, %s3229_s21 }
  0xa7   : > { %p2796_p3 = pneg %p2795_p9  ;;  %p2800_p5 = por %p2799_p2, %p2798_p0 }
  0xa9   : > { %p2802_p1 = por %p2801_p10, %p2800_p5 }
  0xab   : > { %p2803_p11 = pnand %p2802_p1, %p2796_p3 }
  0xad   : > { %2806 = shalt.err (!%p2803_p11)
}
  0xae   : > { %s2807_s14 = scalar_lea.vmem %s320_s13, 32  ;;  %s2947_s17 = smov [#allocation6]  }
  0xaf   : > { %p2808_p12 = scmp.ne.s32.totalorder %s320_s13, %s2807_s14  ;;  %s2812_s28 = sshll.u32 %s2947_s17, 4  ;;  %s2813_s28 = int_to_ptr.vmem [resolvable:$false] %s2812_s28 }
  0xb0   : > { %s2814_s10 = scalar_lea.vmem %s2813_s28, 64  ;;  %p2815_p9 = scmp.lt.s32.totalorder %s320_s13, %s2813_s28 }
  0xb1   : > { %p2810_p13 = pnand %p2808_p12, %p2764_p8  ;;  %p2816_p6 = scmp.lt.s32.totalorder %s2814_s10, %s2807_s14 }
  0xb3   : > { %p2811_p7 = pneg %p2810_p13  ;;  %p2817_p0 = por %p2816_p6, %p2815_p9 }
  0xb5   : > { %p2818_p2 = pnand %p2817_p0, %p2811_p7 }
  0xb7   : > { %2821 = shalt.err (!%p2818_p2)
}
  0xb8   : > { %2428 = dma.hbm_to_vmem [thread:$0]  (!%p3193_p4), %s3229_s21, 32, %s320_s13, %s309_s0  }
  0xb9   : > { %p3517_p3 = scmp.ne.s32.totalorder %s3503_s8, 0 }
  0xba   : > { %s3257_s3 = sand.u32 (!%p3517_p3), 1, %s2928_s25   ;;  %p3518_p6 = scmp.ne.s32.totalorder (!%p3517_p3), %s3511_s9, 0 }
  0xbb   : > { %328 = sbr.rel (%p3517_p3) target bundleno = 3171 (0xc63), region = 44  ;;  %s2117_s2 = sshll.u32 (!%p3517_p3), %s3257_s3, 3 }
  0xbc   : > { %s331_s23 = scalar_lea.sflag (!%p3517_p3), [#allocation4], %s3257_s3  ;;  %s3263_s22 = scalar_lea.vmem (!%p3517_p3), [#allocation3], %s2117_s2 }
  0xc2   : > { %2895 = dma.done.wait (%p3518_p6), %s331_s23, 128  }
  0xc3   : > { %2897 = vsyncadd (%p3518_p6), %s331_s23, 4294967168  ;;  %s339_s0 = sand.u32 1, %s3019_s30   ;;  %s2118_s8 = sshll.u32 %s3257_s3, 1 }
  0xc4   : > { %s340_s11 = scalar_lea.sflag [#allocation7], %s339_s0  ;;  %s3271_s21 = scalar_lea.vmem [#allocation6], %s2118_s8 }
  0xc5   : > { %2899 = dma.done.wait (%p3518_p6), %s340_s11, 32  }
  0xc6   : > { %2901 = vsyncadd (%p3518_p6), %s340_s11, 4294967264  ;;  %p3519_p4 = scmp.eq.s32.totalorder %s3019_s30, 0 }
  0xc8   : > { %2903 = dma.done.wait (%p3519_p4), [#allocation7], 4096   ;;  %p3520_p8 = pmov %p3519_p4 }
  0xc9   : > { %p3521_p5 = pmov %p3519_p4 }
  0xca   : > { %2905 = vsyncadd (%p3520_p8), [#allocation7], 4294963200 }
  0xcb   : > { %2907 = dma.done.wait (%p3521_p5), [#allocation10], 5120   ;;  %p3522_p10 = pmov %p3519_p4 }
  0xcc   : > { %p3523_p1 = pmov %p3519_p4 }
  0xcd   : > { %2909 = vsyncadd (%p3522_p10), [#allocation10], 4294962176 }
  0xce   : > { %2911 = dma.done.wait (%p3523_p1), [#allocation13], 4096   ;;  %p3524_p11 = pmov %p3523_p1 }
  0xcf   : > { %v2948_v0 = vmov 0   ;;  %v2494_v1 = vld [vmem:[#allocation8 + $0xc] ss:$16 sps:$4 sm:$0xff]   ;;  %v2496_v2 = vld [vmem:[#allocation8 + $0x4] ss:$16 sps:$4 sm:$0xff]   ;;  %v2949_v35 = vmov 0.0  }
  0xd0   : > { %2913 = vsyncadd (%p3524_p11), [#allocation13], 4294963200  ;;  %670 = vmatprep.mubr.bf16.mxu1 %v2948_v0  ;;  %629 = vmatprep.mubr.bf16.mxu0 %v2948_v0  ;;  %v2498_v3 = vld [vmem:[#allocation8 + $0x8] ss:$16 sps:$4 sm:$0xff]   ;;  %v2499_v4 = vld [vmem:[#allocation8] ss:$16 sps:$4 sm:$0xff]  }
  0xd1   : > { %638 = vmatprep.subr.bf16.mxu1 %v2494_v1  ;;  %597 = vmatprep.subr.bf16.mxu0 %v2496_v2  ;;  %v2500_v5 = vld [vmem:[#allocation8 + $0x2c] ss:$16 sps:$4 sm:$0xff]   ;;  %v2502_v6 = vld [vmem:[#allocation8 + $0x24] ss:$16 sps:$4 sm:$0xff]   ;;  %v2504_v7 = vld [vmem:[#allocation8 + $0x28] ss:$16 sps:$4 sm:$0xff]  }
  0xd2   : > { %639 = vmatpush1.bf16.msra.mxu1 %v2498_v3  ;;  %598 = vmatpush1.bf16.msra.mxu0 %v2499_v4  ;;  %v2505_v8 = vld [vmem:[#allocation8 + $0x20] ss:$16 sps:$4 sm:$0xff]   ;;  %v2506_v9 = vld [vmem:[#allocation8 + $0x4c] ss:$16 sps:$4 sm:$0xff]   ;;  %v2508_v10 = vld [vmem:[#allocation8 + $0x44] ss:$16 sps:$4 sm:$0xff]  }
  0xd3   : > { %640 = vmatprep.subr.bf16.mxu1 %v2500_v5  ;;  %599 = vmatprep.subr.bf16.mxu0 %v2502_v6  ;;  %v2510_v11 = vld [vmem:[#allocation8 + $0x48] ss:$16 sps:$4 sm:$0xff]   ;;  %v2511_v12 = vld [vmem:[#allocation8 + $0x40] ss:$16 sps:$4 sm:$0xff]   ;;  %v2512_v13 = vld [vmem:[#allocation8 + $0x6c] ss:$16 sps:$4 sm:$0xff]  }
  0xd4   : > { %v2514_v14 = vld [vmem:[#allocation8 + $0x64] ss:$16 sps:$4 sm:$0xff]   ;;  %v2516_v15 = vld [vmem:[#allocation8 + $0x68] ss:$16 sps:$4 sm:$0xff]   ;;  %v2517_v16 = vld [vmem:[#allocation8 + $0x60] ss:$16 sps:$4 sm:$0xff]  }
  0xd5   : > { %v2518_v17 = vld [vmem:[#allocation8 + $0x8c] ss:$16 sps:$4 sm:$0xff]   ;;  %v2520_v18 = vld [vmem:[#allocation8 + $0x84] ss:$16 sps:$4 sm:$0xff]   ;;  %v2522_v19 = vld [vmem:[#allocation8 + $0x88] ss:$16 sps:$4 sm:$0xff]  }
  0xd6   : > { %641 = vmatpush1.bf16.msra.mxu1 %v2504_v7  ;;  %600 = vmatpush1.bf16.msra.mxu0 %v2505_v8  ;;  %v2523_v20 = vld [vmem:[#allocation8 + $0x80] ss:$16 sps:$4 sm:$0xff]   ;;  %v2524_v21 = vld [vmem:[#allocation8 + $0xac] ss:$16 sps:$4 sm:$0xff]   ;;  %v2526_v22 = vld [vmem:[#allocation8 + $0xa4] ss:$16 sps:$4 sm:$0xff]  }
  0xd7   : > { %642 = vmatprep.subr.bf16.mxu1 %v2506_v9  ;;  %601 = vmatprep.subr.bf16.mxu0 %v2508_v10  ;;  %v2528_v23 = vld [vmem:[#allocation8 + $0xa8] ss:$16 sps:$4 sm:$0xff]   ;;  %v2529_v24 = vld [vmem:[#allocation8 + $0xa0] ss:$16 sps:$4 sm:$0xff]   ;;  %v2530_v25 = vld [vmem:[#allocation8 + $0xcc] ss:$16 sps:$4 sm:$0xff]  }
  0xd8   : > { %v2532_v26 = vld [vmem:[#allocation8 + $0xc4] ss:$16 sps:$4 sm:$0xff]   ;;  %v2534_v27 = vld [vmem:[#allocation8 + $0xc8] ss:$16 sps:$4 sm:$0xff]   ;;  %v2535_v28 = vld [vmem:[#allocation8 + $0xc0] ss:$16 sps:$4 sm:$0xff]  }
  0xd9   : > { %v2536_v29 = vld [vmem:[#allocation8 + $0xec] ss:$16 sps:$4 sm:$0xff]   ;;  %v2538_v30 = vld [vmem:[#allocation8 + $0xe4] ss:$16 sps:$4 sm:$0xff]   ;;  %v2540_v31 = vld [vmem:[#allocation8 + $0xe8] ss:$16 sps:$4 sm:$0xff]  }
  0xda   : > { %643 = vmatpush1.bf16.msra.mxu1 %v2510_v11  ;;  %602 = vmatpush1.bf16.msra.mxu0 %v2511_v12  ;;  %v2541_v32 = vld [vmem:[#allocation8 + $0xe0] ss:$16 sps:$4 sm:$0xff]   ;;  %vm2950_vm0 = vmmov 0   ;;  %vm685_vm1 = vcmask 261120   ;;  %s2951_s9 = smov 96   ;;  %vm753_vm2 = vcmask 1043456  }
  0xdb   : > { %644 = vmatprep.subr.bf16.mxu1 %v2512_v13  ;;  %603 = vmatprep.subr.bf16.mxu0 %v2514_v14  ;;  %v403_v33 = vld [vmem:[%s3263_s22] sm:$0xff]  ;;  %s2952_s13 = smov 64   ;;  %s2953_s12 = smov 32   ;;  %v683_v50 = vld [vmem:[%s3271_s21] sm:$0x3]  ;;  %vm736_vm5 = vcmask 64512  }
  0xdc   : > { %v404_v34 = vpack.c.bf16 %v403_v33, %v403_v33  ;;  %vm684_vm3 = vnez %v683_v50  ;;  %s2124_s16 = sshll.u32 %s3257_s3, 5  ;;  %vm918_vm6 = vcmask 523520   ;;  %vm1037_vm7 = vcmask 785920   ;;  %s2247_s14 = sshll.u32 %s3019_s30, 9 }
  0xdd   : > { %v732_v51 = vsel %vm684_vm3, 16843009, %v2948_v0  ;;  %s3331_s29 = scalar_lea.vmem [#allocation15], %s2124_s16  ;;  %vm1156_vm8 = vcmask 1048320   ;;  %s3409_s23 = scalar_lea.hbm %s3494_s7, %s2247_s14 }
  0xde   : > { %645 = vmatpush1.bf16.msra.mxu1 %v2516_v15  ;;  %604 = vmatpush1.bf16.msra.mxu0 %v2517_v16  ;;  %v733_v52 = vunpack.c.0.s8 %v732_v51  ;;  %s1939_s17 = sshll.u32 %s3331_s29, 4  ;;  %s1913_s22 = scalar_lea.sflag [#allocation16], %s3257_s3  ;;  %s3411_s17 = int_to_ptr.vmem [resolvable:$true] %s1939_s17 }
  0xdf   : > { %646 = vmatprep.subr.bf16.mxu1 %v2518_v17  ;;  %605 = vmatprep.subr.bf16.mxu0 %v2520_v18  ;;  %s2822_s0 = scalar_lea.vmem %s3411_s17, 512  ;;  %p3527_p13 = scmp.ne.s32.totalorder %s3512_s18, 0 }
  0xe0   : > { %vm3317_vm4 = vcmp.ne.s32.totalorder %v733_v52, 0  ;;  %p2823_p12 = scmp.ne.s32.totalorder %s3411_s17, %s2822_s0  ;;  %s2954_s8 = smov [#allocation15]  }
  0xe1   : > { %s2826_s11 = sshll.u32 %s2954_s8, 4  ;;  %s2827_s11 = int_to_ptr.vmem [resolvable:$false] %s2826_s11 }
  0xe2   : > { %647 = vmatpush1.bf16.msra.mxu1 %v2522_v19  ;;  %606 = vmatpush1.bf16.msra.mxu0 %v2523_v20  ;;  %p2824_p7 = pnand %p2823_p12, %p3527_p13  ;;  %s2828_s21 = scalar_lea.vmem %s2827_s11, 1024 }
  0xe3   : > { %648 = vmatprep.subr.bf16.mxu1 %v2524_v21  ;;  %607 = vmatprep.subr.bf16.mxu0 %v2526_v22  ;;  %p2829_p0 = scmp.lt.s32.totalorder %s3411_s17, %s2827_s11  ;;  %p2830_p2 = scmp.lt.s32.totalorder %s2828_s21, %s2822_s0 }
  0xe4   : > { %p2825_p9 = pneg %p2824_p7 }
  0xe5   : > { %p2831_p3 = por %p2830_p2, %p2829_p0 }
  0xe6   : > { %649 = vmatpush1.bf16.msra.mxu1 %v2528_v23  ;;  %608 = vmatpush1.bf16.msra.mxu0 %v2529_v24 }
  0xe7   : > { %650 = vmatprep.subr.bf16.mxu1 %v2530_v25  ;;  %609 = vmatprep.subr.bf16.mxu0 %v2532_v26  ;;  %p2832_p6 = pnand %p2831_p3, %p2825_p9 }
  0xea   : > { %651 = vmatpush1.bf16.msra.mxu1 %v2534_v27  ;;  %610 = vmatpush1.bf16.msra.mxu0 %v2535_v28 }
  0xeb   : > { %652 = vmatprep.subr.bf16.mxu1 %v2536_v29  ;;  %611 = vmatprep.subr.bf16.mxu0 %v2538_v30 }
  0xee   : > { %653 = vmatpush1.bf16.msra.mxu1 %v2540_v31  ;;  %612 = vmatpush1.bf16.msra.mxu0 %v2541_v32 }
  0xef   : > { %2317 = vmatprep.subr.bf16.mxu1 %v2949_v35  ;;  %2341 = vmatprep.subr.bf16.mxu0 %v2949_v35 }
  0xf1   : > { %671 = vmatmul.mubr.bf16.vlgmr.msra.gmra.mrb[0].mxu1 %v404_v34  ;;  %630 = vmatmul.mubr.bf16.vlgmr.msra.gmra.mrb[0].mxu0 %v404_v34 }
  0xf2   : > { %2319 = vmatprep.mubr.msk.bf16.mxu1 %vm2950_vm0, %v2949_v35  ;;  %2343 = vmatprep.mubr.msk.bf16.mxu0 %vm2950_vm0, %v2949_v35 }
 0x1c4   : > { %v672_v36 = vpop.f32.mrb[0].mxu1  ;;  %v3298_v37 = vpop.f32.mrb[0].mxu0 }
 0x1c5   : > { %v681_v38 = vpack.c.bf16 %v672_v36, %v672_v36  ;;  %v674_v39 = vpop.f32.mrb[1].mxu1  ;;  %v633_v40 = vpop.f32.mrb[1].mxu0 }
 0x1c6   : > { %v679_v41 = vmul.f32 0.17677669, %v633_v40  ;;  %v676_v42 = vpop.f32.mrb[2].mxu1  ;;  %v635_v43 = vpop.f32.mrb[2].mxu0  ;;  %v3303_v48 = vpack.c.bf16 %v674_v39, %v674_v39 }
 0x1c7   : > { %802 = vrot.lane.b32.xlu1 %v681_v38, %s2951_s9  ;;  %v677_v44 = vpop.f32.mrb[3].mxu1  ;;  %v690_v45 = vsel %vm685_vm1, %v681_v38, 0  ;;  %v636_v46 = vpop.f32.mrb[3].mxu0 }
 0x1c8   : > { %v680_v47 = vpack.c.bf16 %v679_v41, %v679_v41  ;;  %2318 = vmatpush3.bf16.xpose.msra.mxu1 %v690_v45  ;;  %v755_v49 = vsel %vm753_vm2, %v3303_v48, 0 }
 0x1c9   : > { %2323 = vmatprep.subr.bf16.mxu1 %v2949_v35 }
 0x1cb   : > { %799 = vrot.lane.b32.xlu1 %v680_v47, %s2951_s9 }
 0x1cf   : > { %920 = vrot.lane.b32.xlu1 %v680_v47, %s2952_s13  ;;  %2320 = vmatmul.mubr.msk.bf16.vlgmr.msra.gmra.mrb[4].mxu1 %vm685_vm1, %v680_v47 }
 0x1d0   : > { %2324 = vmatpush3.bf16.msra.mxu1 %v755_v49  ;;  %2325 = vmatprep.mubr.msk.bf16.mxu1 %vm2950_vm0, %v2949_v35 }
 0x1d1   : > { %2329 = vmatprep.subr.bf16.mxu1 %v2949_v35 }
 0x1d3   : > { %1041 = vrot.lane.b32.xlu1 %v681_v38, %s2953_s12 }
 0x1d7   : > { %1039 = vrot.lane.b32.xlu1 %v680_v47, %s2953_s12 }
 0x239   : > { %v803_v2 = vpop.permute.xlu1 %802 }
 0x23a   : > { %v808_v13 = vsel %vm685_vm1, %v803_v2, 0 }
 0x23d   : > { %v800_v3 = vpop.permute.xlu1 %799 }
 0x241   : > { %v921_v5 = vpop.permute.xlu1 %920 }
 0x245   : > { %v1042_v8 = vpop.permute.xlu1 %1041 }
 0x246   : > { %v1047_v11 = vsel %vm685_vm1, %v1042_v8, 0 }
 0x249   : > { %v1040_v14 = vpop.permute.xlu1 %1039 }
 0x2a2   : > { %v726_v54 = vpop.f32.mrb[4].mxu1 }
 0x2a3   : > { %v735_v55 = vsel %vm3317_vm4, -1e+09, %v726_v54  ;;  %v2321_v56 = vpop.f32.mrb[5].mxu1 }
 0x2a4   : > { %v729_v57 = vpop.f32.mrb[6].mxu1  ;;  %v737_v58 = vsel %vm736_vm5, %v735_v55, -inf }
 0x2a5   : > { %738 = vmax.xlane.f32.xlu0 %v737_v58  ;;  %v2322_v59 = vpop.f32.mrb[7].mxu1 }
 0x332   : > { %v739_v60 = vpop.xlane.xlu0 %738 }
 0x333   : > { %v740_v61 = vsub.f32 %v735_v55, %v739_v60 }
 0x335   : > { %v741_v62 = vmul.f32 1.442695, %v740_v61 }
 0x337   : > { %2630 = vpow2.f32 %v741_v62 }
 0x341   : > { %v2631_v63 = vpop.eup %2630 }
 0x342   : > { %v743_v1 = vsel %vm736_vm5, %v2631_v63, 0.0 }
 0x343   : > { %744 = vadd.xlane.f32.xlu0 %v743_v1 }
 0x359   : > { %922 = vrot.lane.b32.xlu0 %v681_v38, %s2952_s13 }
 0x3d0   : > { %v745_v4 = vpop.xlane.xlu0 %744 }
 0x3d1   : > { %2632 = vrcp.f32 %v745_v4 }
 0x3d4   : > { %v923_v6 = vpop.permute.xlu0 %922 }
 0x3d5   : > { %v928_v7 = vsel %vm685_vm1, %v923_v6, 0 }
 0x3d6   : > { %2342 = vmatpush3.bf16.xpose.msra.mxu0 %v928_v7 }
 0x3d7   : > { %2353 = vmatprep.subr.bf16.mxu0 %v2949_v35 }
 0x3db   : > { %v2633_v9 = vpop.eup %2632 }
 0x3dc   : > { %v747_v10 = vmul.f32 %v2633_v9, %v2631_v63  ;;  %v2542_v9 = vld [vmem:[#allocation9] sm:$0xff]  }
 0x3dd   : > { %2344 = vmatmul.mubr.msk.bf16.vlgmr.msra.gmra.mrb[4].mxu0 %vm685_vm1, %v921_v5 }
 0x3de   : > { %748 = vst.msk [vmem:[%s3331_s29] sm:$0xff] %vm736_vm5, %v747_v10  ;;  %2354 = vmatpush3.bf16.xpose.msra.mxu0 %v1047_v11  ;;  %v749_v12 = vpack.c.bf16 %v747_v10, %v747_v10  ;;  %2355 = vmatprep.mubr.msk.bf16.mxu0 %vm2950_vm0, %v2949_v35  ;;  %v2543_v10 = vld [vmem:[#allocation9 + $0x8] sm:$0xff]   ;;  %v2544_v11 = vld [vmem:[#allocation9 + $0x10] sm:$0xff]  }
 0x3df   : > { %2365 = vmatprep.subr.bf16.mxu0 %v2949_v35 }
 0x3e0   : > { %2326 = vmatmul.mubr.msk.bf16.vlgmr.msra.gmra.mrb[8].mxu1 %vm736_vm5, %v749_v12  ;;  %v2545_v12 = vld [vmem:[#allocation9 + $0x18] sm:$0xff]  }
 0x3e1   : > { %2330 = vmatpush3.bf16.xpose.msra.mxu1 %v808_v13  ;;  %2331 = vmatprep.mubr.msk.bf16.mxu1 %vm2950_vm0, %v2949_v35  ;;  %v2546_v13 = vld [vmem:[#allocation9 + $0x20] sm:$0xff]  }
 0x3e2   : > { %2335 = vmatprep.subr.bf16.mxu1 %v2949_v35 }
 0x3e5   : > { %2356 = vmatmul.mubr.msk.bf16.vlgmr.msra.gmra.mrb[8].mxu0 %vm685_vm1, %v1040_v14  ;;  %v2547_v14 = vld [vmem:[#allocation9 + $0x28] sm:$0xff]  }
 0x3e6   : > { %2381 = vmatprep.mubr.msk.bf16.mxu0 %vm2950_vm0, %v2949_v35  ;;  %2366 = vmatpush3.bf16.msra.mxu0 %v2542_v9  ;;  %v2592_v9 = vld [vmem:[#allocation11 + $0xe0] ss:$16 sps:$4 sm:$0xff]  }
 0x3e7   : > { %2367 = vmatprep.subr.bf16.mxu0 %v2949_v35 }
 0x3e8   : > { %2332 = vmatmul.mubr.msk.bf16.vlgmr.msra.gmra.mrb[12].mxu1 %vm685_vm1, %v800_v3 }
 0x3e9   : > { %2337 = vmatprep.mubr.msk.bf16.mxu1 %vm2950_vm0, %v2949_v35 }
 0x3ea   : > { %2368 = vmatpush3.bf16.msra.mxu0 %v2543_v10  ;;  %v2595_v10 = vld [vmem:[#allocation11 + $0xe8] ss:$16 sps:$4 sm:$0xff]  }
 0x3eb   : > { %2369 = vmatprep.subr.bf16.mxu0 %v2949_v35 }
 0x3ee   : > { %2370 = vmatpush3.bf16.msra.mxu0 %v2544_v11  ;;  %v2598_v11 = vld [vmem:[#allocation12 + $0x40] sm:$0xff]  }
 0x3ef   : > { %2371 = vmatprep.subr.bf16.mxu0 %v2949_v35 }
 0x3f2   : > { %2372 = vmatpush3.bf16.msra.mxu0 %v2545_v12  ;;  %v2599_v12 = vld [vmem:[#allocation12 + $0xc0] sm:$0xff]  }
 0x3f3   : > { %2373 = vmatprep.subr.bf16.mxu0 %v2949_v35 }
 0x3f6   : > { %2374 = vmatpush3.bf16.msra.mxu0 %v2546_v13 }
 0x3f7   : > { %2375 = vmatprep.subr.bf16.mxu0 %v2949_v35 }
 0x3fa   : > { %2376 = vmatpush3.bf16.msra.mxu0 %v2547_v14 }
 0x3fb   : > { %2377 = vmatprep.subr.bf16.mxu0 %v2949_v35 }
 0x4b0   : > { %v964_v15 = vpop.f32.mrb[4].mxu0 }
 0x4b1   : > { %v970_v16 = vsel %vm3317_vm4, -1e+09, %v964_v15  ;;  %v2345_v17 = vpop.f32.mrb[5].mxu0 }
 0x4b2   : > { %v967_v18 = vpop.f32.mrb[6].mxu0  ;;  %v971_v19 = vsel %vm736_vm5, %v970_v16, -inf }
 0x4b3   : > { %v791_v20 = vpop.f32.mrb[8].mxu1  ;;  %972 = vmax.xlane.f32.xlu0 %v971_v19  ;;  %v2346_v21 = vpop.f32.mrb[7].mxu0  ;;  %v2548_v19 = vld [vmem:[#allocation9 + $0x30] sm:$0xff]  }
 0x4b4   : > { %797 = vst.msk [vmem:[#allocation2] sm:$0xff] %vm685_vm1, %v791_v20  ;;  %v2327_v22 = vpop.f32.mrb[9].mxu1  ;;  %2378 = vmatpush3.bf16.msra.mxu0 %v2548_v19  ;;  %v2549_v20 = vld [vmem:[#allocation9 + $0x38] sm:$0xff]   ;;  %v2601_v19 = vld [vmem:[#allocation12 + $0x80] sm:$0xff]  }
 0x4b5   : > { %v794_v23 = vpop.f32.mrb[10].mxu1  ;;  %2379 = vmatprep.subr.bf16.mxu0 %v2949_v35 }
 0x4b6   : > { %v2328_v24 = vpop.f32.mrb[11].mxu1 }
 0x4b8   : > { %v1083_v25 = vpop.f32.mrb[8].mxu0  ;;  %2380 = vmatpush3.bf16.msra.mxu0 %v2549_v20 }
 0x4b9   : > { %v2357_v26 = vpop.f32.mrb[9].mxu0  ;;  %v1089_v34 = vsel %vm3317_vm4, -1e+09, %v1083_v25 }
 0x4ba   : > { %v1086_v27 = vpop.f32.mrb[10].mxu0  ;;  %v1090_v38 = vsel %vm736_vm5, %v1089_v34, -inf }
 0x4bb   : > { %v844_v28 = vpop.f32.mrb[12].mxu1  ;;  %v2358_v29 = vpop.f32.mrb[11].mxu0 }
 0x4bc   : > { %v850_v30 = vsel %vm3317_vm4, -1e+09, %v844_v28  ;;  %v2333_v31 = vpop.f32.mrb[13].mxu1 }
 0x4bd   : > { %v847_v32 = vpop.f32.mrb[14].mxu1  ;;  %v851_v33 = vsel %vm736_vm5, %v850_v30, -inf }
 0x4be   : > { %852 = vmax.xlane.f32.xlu1 %v851_v33  ;;  %v2334_v36 = vpop.f32.mrb[15].mxu1 }
 0x4c2   : > { %1091 = vmax.xlane.f32.xlu1 %v1090_v38 }
 0x540   : > { %v973_v39 = vpop.xlane.xlu0 %972 }
 0x541   : > { %v974_v40 = vsub.f32 %v970_v16, %v973_v39 }
 0x543   : > { %v975_v41 = vmul.f32 1.442695, %v974_v40  ;;  %v2550_v40 = vld [vmem:[#allocation11] ss:$16 sps:$4 sm:$0xff]  }
 0x545   : > { %2634 = vpow2.f32 %v975_v41  ;;  %v2552_v41 = vld [vmem:[#allocation11 + $0x4] ss:$16 sps:$4 sm:$0xff]  }
 0x54b   : > { %v853_v42 = vpop.xlane.xlu1 %852 }
 0x54c   : > { %v854_v43 = vsub.f32 %v850_v30, %v853_v42  ;;  %v2553_v42 = vld [vmem:[#allocation11 + $0x8] ss:$16 sps:$4 sm:$0xff]  }
 0x54e   : > { %v855_v49 = vmul.f32 1.442695, %v854_v43  ;;  %v2555_v43 = vld [vmem:[#allocation11 + $0xc] ss:$16 sps:$4 sm:$0xff]  }
 0x54f   : > { %v2635_v44 = vpop.eup %2634  ;;  %v1092_v45 = vpop.xlane.xlu1 %1091  ;;  %1510 = vmatprep.subr.bf16.mxu0 %v2555_v43  ;;  %v2623_v43 = vld [vmem:[#allocation12 + $0xf0] sm:$0xff]  }
 0x550   : > { %v1093_v46 = vsub.f32 %v1089_v34, %v1092_v45  ;;  %v977_v47 = vsel %vm736_vm5, %v2635_v44, 0.0  ;;  %v2561_v45 = vld [vmem:[#allocation11 + $0x2c] ss:$16 sps:$4 sm:$0xff]  }
 0x551   : > { %978 = vadd.xlane.f32.xlu0 %v977_v47  ;;  %v2564_v47 = vld [vmem:[#allocation11 + $0x44] ss:$16 sps:$4 sm:$0xff]  }
 0x552   : > { %v1094_v50 = vmul.f32 1.442695, %v1093_v46  ;;  %v2556_v46 = vld [vmem:[#allocation11 + $0x20] ss:$16 sps:$4 sm:$0xff]  }
 0x554   : > { %2636 = vpow2.f32 %v1094_v50  ;;  %v2565_v50 = vld [vmem:[#allocation11 + $0x48] ss:$16 sps:$4 sm:$0xff]  }
 0x555   : > { %2638 = vpow2.f32 %v855_v49  ;;  %v2562_v49 = vld [vmem:[#allocation11 + $0x40] ss:$16 sps:$4 sm:$0xff]  }
 0x55e   : > { %v2637_v51 = vpop.eup %2636 }
 0x55f   : > { %v1096_v52 = vsel %vm736_vm5, %v2637_v51, 0.0  ;;  %v2639_v53 = vpop.eup %2638 }
 0x560   : > { %1097 = vadd.xlane.f32.xlu1 %v1096_v52  ;;  %v857_v54 = vsel %vm736_vm5, %v2639_v53, 0.0  ;;  %v2573_v52 = vld [vmem:[#allocation11 + $0x6c] ss:$16 sps:$4 sm:$0xff]  }
 0x564   : > { %858 = vadd.xlane.f32.xlu1 %v857_v54  ;;  %v2571_v54 = vld [vmem:[#allocation11 + $0x68] ss:$16 sps:$4 sm:$0xff]  }
 0x567   : > { %866 = vrot.lane.b32.xlu0 %v3303_v48, %s2951_s9 }
 0x575   : > { %985 = vrot.lane.b32.xlu1 %v3303_v48, %s2952_s13 }
 0x579   : > { %1104 = vrot.lane.b32.xlu1 %v3303_v48, %s2953_s12 }
 0x5de   : > { %v979_v55 = vpop.xlane.xlu0 %978 }
 0x5df   : > { %2640 = vrcp.f32 %v979_v55 }
 0x5e2   : > { %v867_v56 = vpop.permute.xlu0 %866 }
 0x5e3   : > { %v872_v57 = vsel %vm753_vm2, %v867_v56, 0 }
 0x5e4   : > { %2336 = vmatpush3.bf16.msra.mxu1 %v872_v57 }
 0x5e5   : > { %2347 = vmatprep.subr.bf16.mxu1 %v2949_v35 }
 0x5e9   : > { %v2641_v58 = vpop.eup %2640 }
 0x5ea   : > { %v981_v59 = vmul.f32 %v2641_v58, %v2635_v44  ;;  %v2558_v44 = vld [vmem:[#allocation11 + $0x24] ss:$16 sps:$4 sm:$0xff]  }
 0x5ec   : > { %2163 = vst.msk [vmem:[%s3331_s29 + $0x10] sm:$0xff] %vm736_vm5, %v981_v59  ;;  %v984_v6 = vpack.c.bf16 %v981_v59, %v981_v59  ;;  %v2576_v59 = vld [vmem:[#allocation11 + $0x84] ss:$16 sps:$4 sm:$0xff]  }
 0x5ed   : > { %v1098_v60 = vpop.xlane.xlu1 %1097 }
 0x5ee   : > { %2642 = vrcp.f32 %v1098_v60  ;;  %v2579_v60 = vld [vmem:[#allocation11 + $0x8c] ss:$16 sps:$4 sm:$0xff]  }
 0x5f1   : > { %v859_v61 = vpop.xlane.xlu1 %858 }
 0x5f2   : > { %2644 = vrcp.f32 %v859_v61  ;;  %v2574_v61 = vld [vmem:[#allocation11 + $0x80] ss:$16 sps:$4 sm:$0xff]  }
 0x5f5   : > { %v986_v2 = vpop.permute.xlu1 %985 }
 0x5f6   : > { %v991_v4 = vsel %vm753_vm2, %v986_v2, 0  ;;  %v2585_v2 = vld [vmem:[#allocation11 + $0xac] ss:$16 sps:$4 sm:$0xff]  }
 0x5f8   : > { %v2643_v62 = vpop.eup %2642 }
 0x5f9   : > { %v1100_v48 = vmul.f32 %v2643_v62, %v2637_v51  ;;  %v1105_v5 = vpop.permute.xlu1 %1104  ;;  %v2570_v51 = vld [vmem:[#allocation11 + $0x64] ss:$16 sps:$4 sm:$0xff]   ;;  %v2577_v62 = vld [vmem:[#allocation11 + $0x88] ss:$16 sps:$4 sm:$0xff]  }
 0x5fa   : > { %v1110_v7 = vsel %vm753_vm2, %v1105_v5, 0  ;;  %v2586_v5 = vld [vmem:[#allocation11 + $0xc0] ss:$16 sps:$4 sm:$0xff]  }
 0x5fb   : > { %2166 = vst.msk [vmem:[%s3331_s29 + $0x18] sm:$0xff] %vm736_vm5, %v1100_v48  ;;  %v1103_v8 = vpack.c.bf16 %v1100_v48, %v1100_v48  ;;  %v2582_v48 = vld [vmem:[#allocation11 + $0xa4] ss:$16 sps:$4 sm:$0xff]  }
 0x5fc   : > { %v2645_v63 = vpop.eup %2644 }
 0x5fd   : > { %v861_v1 = vmul.f32 %v2645_v63, %v2639_v53  ;;  %v2568_v53 = vld [vmem:[#allocation11 + $0x60] ss:$16 sps:$4 sm:$0xff]  }
 0x5fe   : > { %v2580_v63 = vld [vmem:[#allocation11 + $0xa0] ss:$16 sps:$4 sm:$0xff]  }
 0x5ff   : > { %2160 = vst.msk [vmem:[%s3331_s29 + $0x8] sm:$0xff] %vm736_vm5, %v861_v1  ;;  %v864_v3 = vpack.c.bf16 %v861_v1, %v861_v1  ;;  %v2583_v1 = vld [vmem:[#allocation11 + $0xa8] ss:$16 sps:$4 sm:$0xff]  }
 0x601   : > { %2338 = vmatmul.mubr.msk.bf16.vlgmr.msra.gmra.mrb[16].mxu1 %vm736_vm5, %v864_v3  ;;  %v2588_v3 = vld [vmem:[#allocation11 + $0xc4] ss:$16 sps:$4 sm:$0xff]  }
 0x602   : > { %2348 = vmatpush3.bf16.msra.mxu1 %v991_v4  ;;  %2349 = vmatprep.mubr.msk.bf16.mxu1 %vm2950_vm0, %v2949_v35  ;;  %v2591_v4 = vld [vmem:[#allocation11 + $0xcc] ss:$16 sps:$4 sm:$0xff]  }
 0x603   : > { %2359 = vmatprep.subr.bf16.mxu1 %v2949_v35 }
 0x609   : > { %2350 = vmatmul.mubr.msk.bf16.vlgmr.msra.gmra.mrb[20].mxu1 %vm736_vm5, %v984_v6  ;;  %v2589_v6 = vld [vmem:[#allocation11 + $0xc8] ss:$16 sps:$4 sm:$0xff]  }
 0x60a   : > { %2360 = vmatpush3.bf16.msra.mxu1 %v1110_v7  ;;  %2361 = vmatprep.mubr.msk.bf16.mxu1 %vm2950_vm0, %v2949_v35  ;;  %v2594_v7 = vld [vmem:[#allocation11 + $0xe4] ss:$16 sps:$4 sm:$0xff]  }
 0x60b   : > { %1469 = vmatprep.subr.bf16.mxu1 %v2552_v41  ;;  %v2621_v41 = vld [vmem:[#allocation12 + $0xa8] sm:$0xff]  }
 0x611   : > { %2362 = vmatmul.mubr.msk.bf16.vlgmr.msra.gmra.mrb[24].mxu1 %vm736_vm5, %v1103_v8  ;;  %v2597_v8 = vld [vmem:[#allocation11 + $0xec] ss:$16 sps:$4 sm:$0xff]  }
 0x612   : > { %1501 = vmatprep.mubr.bf16.mxu1 %v2948_v0  ;;  %1470 = vmatpush1.bf16.msra.mxu1 %v2550_v40  ;;  %v2620_v40 = vld [vmem:[#allocation12 + $0x28] sm:$0xff]  }
 0x613   : > { %1471 = vmatprep.subr.bf16.mxu1 %v2558_v44  ;;  %v2624_v44 = vld [vmem:[#allocation12 + $0x30] sm:$0xff]  }
 0x616   : > { %1472 = vmatpush1.bf16.msra.mxu1 %v2556_v46  ;;  %v2626_v46 = vld [vmem:[#allocation12 + $0x78] sm:$0xff]  }
 0x617   : > { %1473 = vmatprep.subr.bf16.mxu1 %v2564_v47  ;;  %v2628_v47 = vld [vmem:[#allocation12 + $0x38] sm:$0xff]  }
 0x61a   : > { %1474 = vmatpush1.bf16.msra.mxu1 %v2562_v49 }
 0x61b   : > { %1475 = vmatprep.subr.bf16.mxu1 %v2570_v51 }
 0x61e   : > { %1476 = vmatpush1.bf16.msra.mxu1 %v2568_v53 }
 0x61f   : > { %1477 = vmatprep.subr.bf16.mxu1 %v2576_v59 }
 0x622   : > { %1478 = vmatpush1.bf16.msra.mxu1 %v2574_v61 }
 0x623   : > { %1479 = vmatprep.subr.bf16.mxu1 %v2582_v48 }
 0x626   : > { %1480 = vmatpush1.bf16.msra.mxu1 %v2580_v63 }
 0x627   : > { %1481 = vmatprep.subr.bf16.mxu1 %v2588_v3 }
 0x62a   : > { %1482 = vmatpush1.bf16.msra.mxu1 %v2586_v5 }
 0x62b   : > { %1483 = vmatprep.subr.bf16.mxu1 %v2594_v7 }
 0x62e   : > { %1484 = vmatpush1.bf16.msra.mxu1 %v2592_v9 }
 0x62f   : > { %2273 = vmatprep.subr.bf16.mxu1 %v2598_v11 }
 0x6d4   : > { %v908_v15 = vpop.f32.mrb[16].mxu1 }
 0x6d5   : > { %915 = vrot.lane.b32.xlu0 %v908_v15, %s2953_s12  ;;  %v2339_v16 = vpop.f32.mrb[17].mxu1 }
 0x6d6   : > { %v911_v17 = vpop.f32.mrb[18].mxu1 }
 0x6d7   : > { %v2340_v18 = vpop.f32.mrb[19].mxu1 }
 0x6d8   : > { %v2600_v18 = vld [vmem:[#allocation12] sm:$0xff]  }
 0x6dc   : > { %v1027_v21 = vpop.f32.mrb[20].mxu1 }
 0x6dd   : > { %1034 = vrot.lane.b32.xlu1 %v1027_v21, %s2952_s13  ;;  %v2351_v22 = vpop.f32.mrb[21].mxu1  ;;  %v2602_v21 = vld [vmem:[#allocation12 + $0x48] sm:$0xff]  }
 0x6de   : > { %v1030_v23 = vpop.f32.mrb[22].mxu1  ;;  %v2603_v22 = vld [vmem:[#allocation12 + $0xc8] sm:$0xff]  }
 0x6df   : > { %v2352_v24 = vpop.f32.mrb[23].mxu1  ;;  %v2604_v23 = vld [vmem:[#allocation12 + $0x8] sm:$0xff]  }
 0x6e0   : > { %v2605_v24 = vld [vmem:[#allocation12 + $0x88] sm:$0xff]  }
 0x6e4   : > { %v1146_v25 = vpop.f32.mrb[24].mxu1 }
 0x6e5   : > { %1153 = vrot.lane.b32.xlu0 %v1146_v25, %s2951_s9  ;;  %v2363_v26 = vpop.f32.mrb[25].mxu1  ;;  %v2606_v25 = vld [vmem:[#allocation12 + $0x50] sm:$0xff]  }
 0x6e6   : > { %v1149_v27 = vpop.f32.mrb[26].mxu1  ;;  %v2607_v26 = vld [vmem:[#allocation12 + $0xd0] sm:$0xff]  }
 0x6e7   : > { %v2364_v28 = vpop.f32.mrb[27].mxu1  ;;  %v2608_v27 = vld [vmem:[#allocation12 + $0x10] sm:$0xff]  }
 0x6e8   : > { %v2609_v28 = vld [vmem:[#allocation12 + $0x90] sm:$0xff]  }
 0x747   : > { %v916_v29 = vpop.permute.xlu0 %915 }
 0x748   : > { %919 = vst.msk [vmem:[#allocation2] sm:$0xff] %vm918_vm6, %v916_v29  ;;  %v2610_v29 = vld [vmem:[#allocation12 + $0x58] sm:$0xff]  }
 0x74f   : > { %v1035_v30 = vpop.permute.xlu1 %1034 }
 0x750   : > { %1038 = vst.msk [vmem:[#allocation2] sm:$0xff] %vm1037_vm7, %v1035_v30  ;;  %v2611_v30 = vld [vmem:[#allocation12 + $0xd8] sm:$0xff]  }
 0x757   : > { %v1154_v35 = vpop.permute.xlu0 %1153 }
 0x758   : > { %1157 = vst.msk [vmem:[#allocation2] sm:$0xff] %vm1156_vm8, %v1154_v35  ;;  %v2612_v35 = vld [vmem:[#allocation12 + $0x18] sm:$0xff]  }
 0x75f   : > { %v1158_v31 = vld [vmem:[#allocation2] sm:$0xff] }
 0x760   : > { %v1159_v32 = vpack.c.bf16 %v1158_v31, %v1158_v31  ;;  %v2613_v31 = vld [vmem:[#allocation12 + $0x98] sm:$0xff]  }
 0x762   : > { %2382 = vmatmul.mubr.bf16.vlgmr.msra.gmra.mrb[12].mxu0 %v1159_v32  ;;  %v2614_v32 = vld [vmem:[#allocation12 + $0x60] sm:$0xff]  }
 0x763   : > { %1542 = vmatprep.mubr.bf16.mxu0 %v2948_v0  ;;  %1511 = vmatpush1.bf16.msra.mxu0 %v2553_v42  ;;  %v2559_v0 = vld [vmem:[#allocation11 + $0x28] ss:$16 sps:$4 sm:$0xff]   ;;  %v2622_v42 = vld [vmem:[#allocation12 + $0x70] sm:$0xff]  }
 0x764   : > { %1512 = vmatprep.subr.bf16.mxu0 %v2561_v45  ;;  %v2625_v45 = vld [vmem:[#allocation12 + $0xb0] sm:$0xff]  }
 0x767   : > { %1513 = vmatpush1.bf16.msra.mxu0 %v2559_v0  ;;  %v2627_v0 = vld [vmem:[#allocation12 + $0xf8] sm:$0xff]  }
 0x835   : > { %v1258_v33 = vpop.f32.mrb[12].mxu0 }
 0x836   : > { %v1259_v34 = vadd.f32 %v1258_v33, %v3298_v37  ;;  %v2383_v36 = vpop.f32.mrb[13].mxu0  ;;  %v2567_v37 = vld [vmem:[#allocation11 + $0x4c] ss:$16 sps:$4 sm:$0xff]   ;;  %v2615_v33 = vld [vmem:[#allocation12 + $0xe0] sm:$0xff]  }
 0x837   : > { %v1261_v38 = vpop.f32.mrb[14].mxu0  ;;  %1514 = vmatprep.subr.bf16.mxu0 %v2567_v37  ;;  %v2617_v36 = vld [vmem:[#allocation12 + $0xa0] sm:$0xff]   ;;  %v2629_v37 = vld [vmem:[#allocation12 + $0xb8] sm:$0xff]  }
 0x838   : > { %1264 = vadd.xlane.f32.xlu1 %v1259_v34  ;;  %v2384_v39 = vpop.f32.mrb[15].mxu0  ;;  %1515 = vmatpush1.bf16.msra.mxu0 %v2565_v50  ;;  %v2618_v38 = vld [vmem:[#allocation12 + $0x68] sm:$0xff]  }
 0x839   : > { %1516 = vmatprep.subr.bf16.mxu0 %v2573_v52  ;;  %v2619_v39 = vld [vmem:[#allocation12 + $0xe8] sm:$0xff]  }
 0x83c   : > { %1517 = vmatpush1.bf16.msra.mxu0 %v2571_v54 }
 0x83d   : > { %1518 = vmatprep.subr.bf16.mxu0 %v2579_v60 }
 0x840   : > { %1519 = vmatpush1.bf16.msra.mxu0 %v2577_v62 }
 0x841   : > { %1520 = vmatprep.subr.bf16.mxu0 %v2585_v2 }
 0x844   : > { %1521 = vmatpush1.bf16.msra.mxu0 %v2583_v1 }
 0x845   : > { %1522 = vmatprep.subr.bf16.mxu0 %v2591_v4 }
 0x848   : > { %1523 = vmatpush1.bf16.msra.mxu0 %v2589_v6 }
 0x849   : > { %1524 = vmatprep.subr.bf16.mxu0 %v2597_v8 }
 0x84c   : > { %1525 = vmatpush1.bf16.msra.mxu0 %v2595_v10 }
 0x84d   : > { %2295 = vmatprep.subr.bf16.mxu0 %v2599_v12 }
 0x8c5   : > { %v1265_v55 = vpop.xlane.xlu1 %1264 }
 0x8c6   : > { %v1267_v56 = vmul.f32 0.0078125, %v1265_v55 }
 0x8c8   : > { %v1268_v57 = vsub.f32 %v1259_v34, %v1267_v56  ;;  %v2616_v34 = vld [vmem:[#allocation12 + $0x20] sm:$0xff]  }
 0x8ca   : > { %v1269_v58 = vmul.f32 %v1268_v57, %v1268_v57 }
 0x8cc   : > { %1270 = vadd.xlane.f32.xlu0 %v1269_v58 }
 0x959   : > { %v1271_v13 = vpop.xlane.xlu0 %1270 }
 0x95a   : > { %v1272_v14 = vmul.f32 0.0078125, %v1271_v13 }
 0x95c   : > { %v1273_v15 = vadd.f32 1e-05, %v1272_v14 }
 0x95e   : > { %2646 = vrsqrt.f32 %v1273_v15 }
 0x968   : > { %v2647_v16 = vpop.eup %2646 }
 0x969   : > { %v3399_v17 = vmul.f32 %v2647_v16, %v1268_v57 }
 0x96b   : > { %v1276_v20 = vpack.c.bf16 %v3399_v17, %v3399_v17 }
 0x96d   : > { %1502 = vmatmul.mubr.bf16.vlgmr.msra.gmra.mrb[28].mxu1 %v1276_v20  ;;  %1543 = vmatmul.mubr.bf16.vlgmr.msra.gmra.mrb[16].mxu0 %v1276_v20 }
 0x96e   : > { %2274 = vmatpush3.bf16.msra.mxu1 %v2600_v18  ;;  %2296 = vmatpush3.bf16.msra.mxu0 %v2601_v19 }
 0x96f   : > { %2275 = vmatprep.subr.bf16.mxu1 %v2602_v21  ;;  %2297 = vmatprep.subr.bf16.mxu0 %v2603_v22 }
 0x972   : > { %2276 = vmatpush3.bf16.msra.mxu1 %v2604_v23  ;;  %2298 = vmatpush3.bf16.msra.mxu0 %v2605_v24 }
 0x973   : > { %2277 = vmatprep.subr.bf16.mxu1 %v2606_v25  ;;  %2299 = vmatprep.subr.bf16.mxu0 %v2607_v26 }
 0x976   : > { %2278 = vmatpush3.bf16.msra.mxu1 %v2608_v27  ;;  %2300 = vmatpush3.bf16.msra.mxu0 %v2609_v28 }
 0x977   : > { %2279 = vmatprep.subr.bf16.mxu1 %v2610_v29  ;;  %2301 = vmatprep.subr.bf16.mxu0 %v2611_v30 }
 0x97a   : > { %2280 = vmatpush3.bf16.msra.mxu1 %v2612_v35  ;;  %2302 = vmatpush3.bf16.msra.mxu0 %v2613_v31 }
 0x97b   : > { %2281 = vmatprep.subr.bf16.mxu1 %v2614_v32  ;;  %2303 = vmatprep.subr.bf16.mxu0 %v2615_v33 }
 0x97e   : > { %2282 = vmatpush3.bf16.msra.mxu1 %v2616_v34  ;;  %2304 = vmatpush3.bf16.msra.mxu0 %v2617_v36 }
 0x97f   : > { %2283 = vmatprep.subr.bf16.mxu1 %v2618_v38  ;;  %2305 = vmatprep.subr.bf16.mxu0 %v2619_v39 }
 0x982   : > { %2284 = vmatpush3.bf16.msra.mxu1 %v2620_v40  ;;  %2306 = vmatpush3.bf16.msra.mxu0 %v2621_v41 }
 0x983   : > { %2285 = vmatprep.subr.bf16.mxu1 %v2622_v42  ;;  %2307 = vmatprep.subr.bf16.mxu0 %v2623_v43 }
 0x986   : > { %2286 = vmatpush3.bf16.msra.mxu1 %v2624_v44  ;;  %2308 = vmatpush3.bf16.msra.mxu0 %v2625_v45 }
 0x987   : > { %2287 = vmatprep.subr.bf16.mxu1 %v2626_v46  ;;  %2309 = vmatprep.subr.bf16.mxu0 %v2627_v0 }
 0x98a   : > { %2288 = vmatpush3.bf16.msra.mxu1 %v2628_v47  ;;  %2310 = vmatpush3.bf16.msra.mxu0 %v2629_v37 }
 0xa40   : > { %v1503_v49 = vpop.f32.mrb[28].mxu1  ;;  %v1544_v50 = vpop.f32.mrb[16].mxu0 }
 0xa41   : > { %v1551_v51 = vmax.f32 %v1503_v49, 0.0  ;;  %v1553_v52 = vmax.f32 %v1544_v50, 0.0  ;;  %v1505_v53 = vpop.f32.mrb[29].mxu1  ;;  %v1546_v54 = vpop.f32.mrb[17].mxu0 }
 0xa42   : > { %v1552_v55 = vmax.f32 %v1505_v53, 0.0  ;;  %v1554_v56 = vmax.f32 %v1546_v54, 0.0  ;;  %v1507_v57 = vpop.f32.mrb[30].mxu1  ;;  %v1548_v58 = vpop.f32.mrb[18].mxu0 }
 0xa43   : > { %v1508_v59 = vpop.f32.mrb[31].mxu1  ;;  %v1549_v60 = vpop.f32.mrb[19].mxu0  ;;  %v1555_v48 = vpack.c.bf16 %v1551_v51, %v1551_v51  ;;  %v1557_v63 = vpack.c.bf16 %v1553_v52, %v1553_v52 }
 0xa44   : > { %v1556_v61 = vpack.c.bf16 %v1552_v55, %v1552_v55  ;;  %v1558_v62 = vpack.c.bf16 %v1554_v56, %v1554_v56 }
 0xa46   : > { %1847 = vmatprep.mubr.bf16.mxu1 %v1556_v61  ;;  %1887 = vmatprep.mubr.bf16.mxu0 %v1558_v62 }
 0xa47   : > { %1848 = vmatmul.mubr.bf16.vlgmr.msra.gmra.mrb[32].mxu1 %v1555_v48  ;;  %1888 = vmatmul.mubr.bf16.vlgmr.msra.gmra.mrb[20].mxu0 %v1557_v63 }
 0xb1a   : > { %v2289_v1 = vpop.f32.mrb[32].mxu1  ;;  %v2311_v2 = vpop.f32.mrb[20].mxu0 }
 0xb1b   : > { %v2290_v3 = vpop.f32.mrb[33].mxu1  ;;  %v2312_v4 = vpop.f32.mrb[21].mxu0 }
 0xb1c   : > { %v2291_v5 = vadd.f32 %v2290_v3, %v2289_v1  ;;  %v2313_v6 = vadd.f32 %v2312_v4, %v2311_v2  ;;  %v2292_v7 = vpop.f32.mrb[34].mxu1  ;;  %v2314_v8 = vpop.f32.mrb[22].mxu0 }
 0xb1d   : > { %v2293_v9 = vpop.f32.mrb[35].mxu1  ;;  %v2315_v10 = vpop.f32.mrb[23].mxu0 }
 0xb1e   : > { %v1850_v11 = vadd.f32 %v2291_v5, %v3399_v17 }
 0xb20   : > { %v1890_v12 = vadd.f32 %v2313_v6, %v1850_v11 }
 0xb22   : > { %1895 = vadd.xlane.f32.xlu0 %v1890_v12 }
 0xbaf   : > { %v1896_v13 = vpop.xlane.xlu0 %1895 }
 0xbb0   : > { %v1897_v14 = vmul.f32 0.0078125, %v1896_v13 }
 0xbb2   : > { %v1898_v15 = vsub.f32 %v1890_v12, %v1897_v14 }
 0xbb4   : > { %v1899_v16 = vmul.f32 %v1898_v15, %v1898_v15 }
 0xbb6   : > { %1900 = vadd.xlane.f32.xlu1 %v1899_v16 }
 0xbb7   : > { %2835 = shalt.err (!%p2832_p6)
}
 0xbb8   : > { %s2836_s9 = scalar_lea.hbm %s3409_s23, 512  ;;  %s2840_s16 = scalar_lea.hbm %s3494_s7, 1024 }
 0xbb9   : > { %p2837_p4 = scmp.ne.s32.totalorder %s3409_s23, %s2836_s9  ;;  %p2841_p10 = scmp.lt.u32.totalorder %s3409_s23, %s3494_s7 }
 0xbba   : > { %p2842_p1 = scmp.lt.u32.totalorder %s2840_s16, %s2836_s9  ;;  %p2844_p12 = scmp.lt.u32.totalorder %s2836_s9, %s3409_s23 }
 0xbbb   : > { %p2838_p8 = pnand %p2837_p4, %p3527_p13 }
 0xbbc   : > { %p2843_p11 = por %p2842_p1, %p2841_p10 }
 0xbbd   : > { %p2839_p5 = pneg %p2838_p8 }
 0xbbe   : > { %p2845_p7 = por %p2844_p12, %p2843_p11 }
 0xbc0   : > { %p2846_p9 = pnand %p2845_p7, %p2839_p5 }
 0xbc2   : > { %2849 = shalt.err (!%p2846_p9)
}
 0xbc3   : > { %s2955_s28 = smov 128   ;;  %s2956_s10 = smov 8  }
 0xbc4   : > { %2406 = dma.vmem_to_hbm [thread:$0]  (%p3527_p13), %s3411_s17, 512, %s3409_s23, %s1913_s22, %s2955_s28, %s2955_s28, %s2956_s10  }
 0xbc5   : > { %s2242_s0 = sshll.u32 %s3019_s30, 7  ;;  %s392_s8 = scalar_lea.vmem [#allocation14], %s2117_s2 }
 0xbc6   : > { %s1926_s11 = sshll.u32 %s392_s8, 4  ;;  %s3443_s13 = scalar_lea.hbm %s3493_s6, %s2242_s0  ;;  %s3445_s11 = int_to_ptr.vmem [resolvable:$true] %s1926_s11 }
 0xbc7   : > { %s1908_s17 = scalar_lea.sflag [#allocation5], %s3257_s3  ;;  %s2850_s23 = scalar_lea.vmem %s3445_s11, 128 }
 0xbc8   : > { %p2851_p0 = scmp.ne.s32.totalorder %s3445_s11, %s2850_s23  ;;  %s2957_s30 = smov [#allocation14]  }
 0xbc9   : > { %s2854_s2 = sshll.u32 %s2957_s30, 4  ;;  %s2855_s2 = int_to_ptr.vmem [resolvable:$false] %s2854_s2 }
 0xbca   : > { %p2852_p2 = pnand %p2851_p0, %p3527_p13  ;;  %s2856_s22 = scalar_lea.vmem %s2855_s2, 256 }
 0xbcb   : > { %p2857_p6 = scmp.lt.s32.totalorder %s3445_s11, %s2855_s2  ;;  %p2858_p4 = scmp.lt.s32.totalorder %s2856_s22, %s2850_s23 }
 0xbcc   : > { %p2853_p3 = pneg %p2852_p2 }
 0xbcd   : > { %p2859_p8 = por %p2858_p4, %p2857_p6 }
 0xbcf   : > { %p2860_p5 = pnand %p2859_p8, %p2853_p3 }
 0xc43   : > { %v1901_v17 = vpop.xlane.xlu1 %1900 }
 0xc44   : > { %v1902_v18 = vmul.f32 0.0078125, %v1901_v17 }
 0xc46   : > { %v1903_v19 = vadd.f32 1e-05, %v1902_v18 }
 0xc48   : > { %2648 = vrsqrt.f32 %v1903_v19 }
 0xc52   : > { %v2649_v20 = vpop.eup %2648 }
 0xc53   : > { %v1905_v21 = vmul.f32 %v2649_v20, %v1898_v15 }
 0xc55   : > { %1906 = vst [vmem:[%s392_s8] sm:$0xff] %v1905_v21 }
 0xc56   : > { %2863 = shalt.err (!%p2860_p5)
}
 0xc57   : > { %s2864_s3 = scalar_lea.hbm %s3443_s13, 128  ;;  %s2868_s29 = scalar_lea.hbm %s3493_s6, 256 }
 0xc58   : > { %p2865_p10 = scmp.ne.s32.totalorder %s3443_s13, %s2864_s3  ;;  %p2869_p12 = scmp.lt.u32.totalorder %s3443_s13, %s3493_s6 }
 0xc59   : > { %p2870_p7 = scmp.lt.u32.totalorder %s2868_s29, %s2864_s3  ;;  %p2872_p0 = scmp.lt.u32.totalorder %s2864_s3, %s3443_s13 }
 0xc5a   : > { %p2866_p1 = pnand %p2865_p10, %p3527_p13 }
 0xc5b   : > { %p2871_p9 = por %p2870_p7, %p2869_p12 }
 0xc5c   : > { %p2867_p11 = pneg %p2866_p1 }
 0xc5d   : > { %p2873_p2 = por %p2872_p0, %p2871_p9 }
 0xc5f   : > { %p2874_p3 = pnand %p2873_p2, %p2867_p11 }
 0xc61   : > { %2877 = shalt.err (!%p2874_p3)
}
 0xc62   : > { %2405 = dma.vmem_to_hbm [thread:$0]  (%p3527_p13), %s3445_s11, 128, %s3443_s13, %s1908_s17  }
 0xc63 PF: > { %s1954_s10 = sand.u32 1, %s2924_s24   ;;  %p3528_p6 = scmp.ne.s32.totalorder %s3513_s20, 0 }
 0xc64   : > { %p3529_p4 = scmp.ge.s32.totalorder %s2936_s27, 2  ;;  %s1955_s0 = scalar_lea.sflag [#allocation5], %s1954_s10 }
 0xc66   : > { %p2430_p8 = pnand %p3529_p4, %p3528_p6 }
 0xc68   : > { %2915 = dma.done.wait (!%p2430_p8), %s1955_s0, 128  }
 0xc69   : > { %2917 = vsyncadd (!%p2430_p8), %s1955_s0, 4294967168  ;;  %s1964_s8 = scalar_lea.sflag [#allocation16], %s1954_s10 }
 0xc6a   : > { %2919 = dma.done.wait (!%p2430_p8), %s1964_s8, 512  }
 0xc6b   : > { %2921 = vsyncadd (!%p2430_p8), %s1964_s8, 4294966784  ;;  %p29_p13 = scmp.ge.s32.totalorder %s3146_s19, 4   ;;  %s3530_s24 = smov %s2928_s25 }
 0xc6c   : > { %s3531_s25 = smov %s2932_s26  ;;  %s3532_s26 = smov %s3157_s15 }
 0xc6d   : > { %s3533_s27 = smov %s3146_s19  ;;  %31 = sbr.rel (!%p29_p13) target bundleno = 15 (0xf), region = 138 }
 0xc74   :  { %1969 = vsyncpa [#allocation4], 1 }
 0xc75   :  { %1971 = vsyncpa [#allocation4 + $0x1], 1 }
 0xc76   :  { %1972 = vsyncpa [#allocation7], 1 }
 0xc77   :  { %1974 = vsyncpa [#allocation7 + $0x1], 1 }
 0xc78   :  { %1975 = vsyncpa [#allocation10], 1 }
 0xc79   :  { %1976 = vsyncpa [#allocation13], 1 }
 0xc7a   :  { %1977 = vsyncpa [#allocation5], 1 }
 0xc7b   :  { %1979 = vsyncpa [#allocation5 + $0x1], 1 }
 0xc7c   :  { %1980 = vsyncpa [#allocation16], 1 }
 0xc7d   :  { %1982 = vsyncpa [#allocation16 + $0x1], 1 }

</bundles_post_ra>
